<compile_context>
chip_gen: v6e
topology: v6e:2x2x1
jax: 0.10.0
libtpu: 0.0.40
codegen_flags: <defaults>
</compile_context>

<pallas_src>
import jax
import jax.numpy as jnp
from jax import lax
from jax.experimental import pallas as pl
from jax.experimental.pallas import tpu as pltpu

D_MODEL = 32
NUM_RELATIONS = 40
N_REL_SLOTS = 48          # relation-value slots 1..48 (>= 40); 48*N = 384 cols = 3 lane tiles


def _gcn_kernel(x_ref, adjf_ref, adjr_ref, wall_ref, tmap_ref, rel_ref,
                tbl_ref, d1_ref, out_ref):
    """Fused 3-direction relational graph conv for BB batch elements.

    x_ref:    (BB*N, D)            node features (rows = (b, node j))
    adjf_ref: (BB*N, N) f32        adjf[(b,j), i] = adj[b, i, j]   (dir 2 orientation)
    adjr_ref: (BB*N, N) f32        adjr[(b,j), i] = adj[b, j, i]   (dir 3 / dir 1 orientation)
    wall_ref: (D, 6*N*D)           lane-tiled [h2|g2|h3|g3|h1|g1] projection weights
    tmap_ref: (N, 48*N + N*D)      0/1 map: relation-tiling cols then d-tiling cols
    rel_ref:  (1, 48*N)            relation value per relation-tiled column (idx+1)
    tbl_ref:  (2, 48*N, 2*N*D)     block-diag [bias | gate-bias] tables for dir 2 / dir 3
    d1_ref:   (2, N*D)             dir-1 bias row and gate-bias row, tiled over dest nodes
    out_ref:  (BB, N*D)
    """
    bb, nd = out_ref.shape
    rcols = rel_ref.shape[1]
    n_nodes = tmap_ref.shape[0]

    x = x_ref[...]                                                        # (BB*N, D)

    # One MXU pass: lane-tiled h/g for all three directions (slices on 256-lane boundaries).
    hg = jnp.dot(x, wall_ref[...], preferred_element_type=jnp.float32)    # (BB*N, 6*nd)
    h2, g2 = hg[:, 0:nd], hg[:, nd:2 * nd]
    h3, g3 = hg[:, 2 * nd:3 * nd], hg[:, 3 * nd:4 * nd]
    h1, g1 = hg[:, 4 * nd:5 * nd], hg[:, 5 * nd:6 * nd]

    # Lane-tile the adjacency with one tiny dot per orientation:
    #   rep[:, idx*N + i]      = adj_src[(b,j), i]    (relation-tiled, for the one-hot)
    #   rep[:, rcols + i*D + d] = adj_src[(b,j), i]   (d-tiled, for validity masks)
    tmap = tmap_ref[...]
    rep_f = jnp.dot(adjf_ref[...], tmap, preferred_element_type=jnp.float32)
    rep_r = jnp.dot(adjr_ref[...], tmap, preferred_element_type=jnp.float32)
    arel_f, adf = rep_f[:, :rcols], rep_f[:, rcols:]
    arel_r, adr = rep_r[:, :rcols], rep_r[:, rcols:]

    # Lane-dense one-hot over relation values (exact integer compares on f32).
    relvals = rel_ref[...]                                                # (1, rcols)
    oh_f = (arel_f == relvals).astype(jnp.float32)                        # (BB*N, rcols)
    oh_r = (arel_r == relvals).astype(jnp.float32)

    # Per-edge bias / gate-bias gather, already in the [dest i, d] lane-tiled layout:
    #   sel[(b,j), i*D+d] = bias_table[adj_src[(b,j), i] - 1, d]
    sel_f = jnp.dot(oh_f, tbl_ref[0], preferred_element_type=jnp.float32)  # (BB*N, 2*nd)
    sel_r = jnp.dot(oh_r, tbl_ref[1], preferred_element_type=jnp.float32)

    hi = float(NUM_RELATIONS)
    v2 = ((adf >= 2.0) & (adf <= hi)).astype(jnp.float32)                 # relations 2..40 on adj
    v3 = ((adr >= 2.0) & (adr <= hi)).astype(jnp.float32)                 # relations 2..40 on adj^T
    v1 = (adr == 1.0).astype(jnp.float32)                                 # relation 1 on adj^T

    b1, gb1 = d1_ref[0:1, :], d1_ref[1:2, :]                              # (1, nd) each

    # Per-edge gated messages for all three directions, fully lane-dense (BB*N, 256).
    msg = (v2 * (h2 + sel_f[:, :nd]) * jax.nn.sigmoid(g2 + sel_f[:, nd:])
           + v3 * (h3 + sel_r[:, :nd]) * jax.nn.sigmoid(g3 + sel_r[:, nd:])
           + v1 * (h1 + b1) * jax.nn.sigmoid(g1 + gb1))

    # Reduce over source nodes j (sublane reduce inside each batch's row group), ReLU, store
    # one lane-dense (BB, 256) slab.
    out_ref[...] = jnp.maximum(
        jnp.sum(msg.reshape(bb, n_nodes, nd), axis=1), 0.0)


def _build_table(b_tab, gb_tab, n_nodes, n_slots, d):
    """Block-diagonal expanded [bias | gate-bias] table.

    Row (idx*N + i), col (i'*D + d) holds (i == i') * bias[idx - 1, d], where relation value
    = idx + 1 (idx 0 -> relation 1, unused for the 2..40 directions -> zeros)."""
    nr = b_tab.shape[0]
    eye = jnp.eye(n_nodes, dtype=jnp.float32)

    def expand(t):
        vals = jnp.zeros((n_slots, d), jnp.float32).at[1:1 + nr].set(t)
        blk = jnp.einsum("ij,rd->rijd", eye, vals)                 # (slots, N, N, D)
        return blk.reshape(n_slots * n_nodes, n_nodes * d)

    return jnp.concatenate([expand(b_tab), expand(gb_tab)], axis=1)  # (slots*N, 2*N*D)


def graph_convolution_forward(node, node_mask, adj_mat, params):
    """Matches GraphConvolution.forward.  node_mask is accepted but unused (as in PyTorch)."""
    del node_mask
    node = node.astype(jnp.float32)
    B, N, D = node.shape
    nr = NUM_RELATIONS
    rb = nr - 1
    nd = N * D
    nslots = N_REL_SLOTS
    rcols = nslots * N

    w_dir = params["fc_dir_weight"].astype(jnp.float32)      # (3, D, D), PyTorch (out, in)
    w_gate = params["fc_gate_weight"].astype(jnp.float32)    # (3, D, D)
    b_dir = params["fc_dir_bias"].astype(jnp.float32)        # (2*nr - 1, D)
    b_gate = params["fc_gate_bias"].astype(jnp.float32)

    # Kernel direction order: [module dir 2, module dir 3, module dir 1] = weight idx [1, 2, 0].
    # h = x @ W^T, g = x @ (Wg W)^T  (gate pre-combined so h/g are independent dots);
    # each weight is lane-tiled over the N dest-node column blocks.
    blocks = []
    for m in (1, 2, 0):
        wt = w_dir[m].T
        wgt = jnp.matmul(w_gate[m], w_dir[m], precision=lax.Precision.HIGHEST).T
        blocks.append(jnp.tile(wt, (1, N)))
        blocks.append(jnp.tile(wgt, (1, N)))
    w_all = jnp.concatenate(blocks, axis=1)                   # (D, 6*N*D)

    eye = jnp.eye(N, dtype=jnp.float32)
    t_map = jnp.concatenate([jnp.tile(eye, (1, nslots)),      # [i', idx*N + i] = (i == i')
                             jnp.repeat(eye, D, axis=1)],     # [i', i*D + d]   = (i == i')
                            axis=1)                           # (N, rcols + N*D)

    relvals = jnp.repeat(jnp.arange(1, nslots + 1, dtype=jnp.float32), N)[None, :]  # (1, rcols)

    tables = jnp.stack([
        _build_table(b_dir[:rb], b_gate[:rb], N, nslots, D),            # dir 2 (adj)
        _build_table(b_dir[rb:2 * rb], b_gate[rb:2 * rb], N, nslots, D),  # dir 3 (adj^T)
    ])                                                        # (2, rcols, 2*N*D)

    dir1_bias = jnp.stack([jnp.tile(b_dir[2 * rb], N),        # dir 1 bias, tiled over dest i
                           jnp.tile(b_gate[2 * rb], N)])      # (2, N*D)

    x2 = node.reshape(B * N, D)
    adj_f = jnp.swapaxes(adj_mat, 1, 2).reshape(B * N, N).astype(jnp.float32)  # adj[b,i,j]
    adj_r = adj_mat.reshape(B * N, N).astype(jnp.float32)                      # adj[b,j,i]

    bb = B if B <= 8 else 8
    grid = (pl.cdiv(B, bb),)

    out2d = pl.pallas_call(
        _gcn_kernel,
        out_shape=jax.ShapeDtypeStruct((B, nd), jnp.float32),
        grid_spec=pltpu.PrefetchScalarGridSpec(
            num_scalar_prefetch=0,
            grid=grid,
            in_specs=[
                pl.BlockSpec((bb * N, D), lambda b: (b, 0)),            # x2
                pl.BlockSpec((bb * N, N), lambda b: (b, 0)),            # adj (fwd orientation)
                pl.BlockSpec((bb * N, N), lambda b: (b, 0)),            # adj (rev orientation)
                pl.BlockSpec((D, 6 * nd), lambda b: (0, 0)),            # fused weights (resident)
                pl.BlockSpec((N, rcols + nd), lambda b: (0, 0)),        # tiling map (resident)
                pl.BlockSpec((1, rcols), lambda b: (0, 0)),             # relation values row
                pl.BlockSpec((2, rcols, 2 * nd), lambda b: (0, 0, 0)),  # bias tables (resident)
                pl.BlockSpec((2, nd), lambda b: (0, 0)),                # dir-1 bias rows
            ],
            out_specs=pl.BlockSpec((bb, nd), lambda b: (b, 0)),
        ),
        # Grid is 1 at this size after BB-batching; per-step work is too small for a
        # v7x megacore split to pay off ("parallel" only helps once per-step time >> setup).
        compiler_params=pltpu.CompilerParams(dimension_semantics=("arbitrary",)),
    )(x2, adj_f, adj_r, w_all, t_map, relvals, tables, dir1_bias)

    return out2d.reshape(B, N, D)


# ---------- pure-JAX reference (mirrors the PyTorch code) ----------
def _direction_ref(x, adj, w, wg, biases, gbiases, relations):
    h = x @ w.T
    g = h @ wg.T
    out = jnp.zeros_like(h)
    for i, r in enumerate(relations):
        mask = (adj == r).astype(jnp.float32)
        g1 = jax.nn.sigmoid(g + gbiases[i])
        out = out + jnp.einsum("bij,bjd->bid", mask, (h + biases[i]) * g1)
    return out


def reference_forward(node, adj_mat, params):
    nr = NUM_RELATIONS
    w_dir, w_gate = params["fc_dir_weight"], params["fc_gate_weight"]
    b_dir, b_gate = params["fc_dir_bias"], params["fc_gate_bias"]
    out = _direction_ref(node, adj_mat, w_dir[1], w_gate[1],
                         b_dir[:nr - 1], b_gate[:nr - 1], range(2, nr + 1))
    adj_t = jnp.swapaxes(adj_mat, -1, -2)
    out += _direction_ref(node, adj_t, w_dir[2], w_gate[2],
                          b_dir[nr - 1:-1], b_gate[nr - 1:-1], range(2, nr + 1))
    out += _direction_ref(node, adj_t, w_dir[0], w_gate[0],
                          b_dir[-1:], b_gate[-1:], [1])
    return jnp.maximum(out, 0.0)


if __name__ == "__main__":
    B, N, D = 2, 8, D_MODEL
    key = jax.random.PRNGKey(0)
    k = jax.random.split(key, 6)

    node = jax.random.normal(k[0], (B, N, D), jnp.float32)
    node_mask = jnp.ones((B, N), jnp.float32)             # unused, as in torch
    adj_mat = jax.random.randint(k[1], (B, N, N), 0, NUM_RELATIONS + 1, jnp.int32)

    params = {
        "fc_dir_weight": 0.1 * jax.random.normal(k[2], (3, D, D), jnp.float32),
        "fc_gate_weight": 0.1 * jax.random.normal(k[3], (3, D, D), jnp.float32),
        "fc_dir_bias": 0.1 * jax.random.normal(k[4], (2 * NUM_RELATIONS - 1, D),
                                               jnp.float32),
        "fc_gate_bias": 0.1 * jax.random.normal(k[5], (2 * NUM_RELATIONS - 1, D),
                                                jnp.float32),
    }

    out = graph_convolution_forward(node, node_mask, adj_mat, params)
    out = jax.block_until_ready(out)

    ref = reference_forward(node, adj_mat, params)
    assert out.shape == (B, N, D)
    assert jnp.allclose(out, ref, atol=1e-4, rtol=1e-4), "mismatch vs reference"
    print("KERNEL_OK")
</pallas_src>

<mosaic_0001>
module attributes {stable_mosaic.version = 11 : i64} {
  func.func @_gcn_kernel(%arg0: i32, %arg1: memref<16x32xf32, #tpu.memory_space<vmem>>, %arg2: memref<16x8xf32, #tpu.memory_space<vmem>>, %arg3: memref<16x8xf32, #tpu.memory_space<vmem>>, %arg4: memref<32x1536xf32, #tpu.memory_space<vmem>>, %arg5: memref<8x640xf32, #tpu.memory_space<vmem>>, %arg6: memref<1x384xf32, #tpu.memory_space<vmem>>, %arg7: memref<2x384x512xf32, #tpu.memory_space<vmem>>, %arg8: memref<2x256xf32, #tpu.memory_space<vmem>>, %arg9: memref<2x256xf32, #tpu.memory_space<vmem>>) attributes {dimension_semantics = [#tpu.dimension_semantics<arbitrary>], iteration_bounds = array<i64: 1>, scalar_prefetch = 0 : i64, scratch_operands = 0 : i64, tpu.core_type = #tpu.core_type<tc>, window_params = [{transform_indices = @transform_0, window_bounds = array<i64: 16, 32>}, {transform_indices = @transform_1, window_bounds = array<i64: 16, 8>}, {transform_indices = @transform_2, window_bounds = array<i64: 16, 8>}, {pipeline_mode = #tpu.pipeline_mode<synchronous>, transform_indices = @transform_3, window_bounds = array<i64: 32, 1536>}, {pipeline_mode = #tpu.pipeline_mode<synchronous>, transform_indices = @transform_4, window_bounds = array<i64: 8, 640>}, {pipeline_mode = #tpu.pipeline_mode<synchronous>, transform_indices = @transform_5, window_bounds = array<i64: 1, 384>}, {pipeline_mode = #tpu.pipeline_mode<synchronous>, transform_indices = @transform_6, window_bounds = array<i64: 2, 384, 512>}, {pipeline_mode = #tpu.pipeline_mode<synchronous>, transform_indices = @transform_7, window_bounds = array<i64: 2, 256>}, {transform_indices = @transform_8, window_bounds = array<i64: 2, 256>}]} {
    %c0 = arith.constant 0 : index
    %c0_0 = arith.constant 0 : index
    %0 = vector.load %arg1[%c0, %c0_0] : memref<16x32xf32, #tpu.memory_space<vmem>>, vector<16x32xf32>
    %c0_1 = arith.constant 0 : index
    %c0_2 = arith.constant 0 : index
    %1 = vector.load %arg4[%c0_1, %c0_2] : memref<32x1536xf32, #tpu.memory_space<vmem>>, vector<32x1536xf32>
    %cst = arith.constant dense<0.000000e+00> : vector<16x1536xf32>
    %2 = tpu.matmul %0, %1, %cst {dimension_numbers = #tpu.dot_dimension_numbers<[1], [0], [0], [1], [0, 0, 1, 1], [], []>} : vector<16x32xf32>, vector<32x1536xf32>, vector<16x1536xf32> -> vector<16x1536xf32>
    %3 = vector.extract_strided_slice %2 {offsets = [0, 0], sizes = [16, 256], strides = [1, 1]} : vector<16x1536xf32> to vector<16x256xf32>
    %4 = vector.extract_strided_slice %2 {offsets = [0, 256], sizes = [16, 256], strides = [1, 1]} : vector<16x1536xf32> to vector<16x256xf32>
    %5 = vector.extract_strided_slice %2 {offsets = [0, 512], sizes = [16, 256], strides = [1, 1]} : vector<16x1536xf32> to vector<16x256xf32>
    %6 = vector.extract_strided_slice %2 {offsets = [0, 768], sizes = [16, 256], strides = [1, 1]} : vector<16x1536xf32> to vector<16x256xf32>
    %7 = vector.extract_strided_slice %2 {offsets = [0, 1024], sizes = [16, 256], strides = [1, 1]} : vector<16x1536xf32> to vector<16x256xf32>
    %8 = vector.extract_strided_slice %2 {offsets = [0, 1280], sizes = [16, 256], strides = [1, 1]} : vector<16x1536xf32> to vector<16x256xf32>
    %c0_3 = arith.constant 0 : index
    %c0_4 = arith.constant 0 : index
    %9 = vector.load %arg5[%c0_3, %c0_4] : memref<8x640xf32, #tpu.memory_space<vmem>>, vector<8x640xf32>
    %c0_5 = arith.constant 0 : index
    %c0_6 = arith.constant 0 : index
    %10 = vector.load %arg2[%c0_5, %c0_6] : memref<16x8xf32, #tpu.memory_space<vmem>>, vector<16x8xf32>
    %cst_7 = arith.constant dense<0.000000e+00> : vector<16x640xf32>
    %11 = tpu.matmul %10, %9, %cst_7 {dimension_numbers = #tpu.dot_dimension_numbers<[1], [0], [0], [1], [0, 0, 1, 1], [], []>} : vector<16x8xf32>, vector<8x640xf32>, vector<16x640xf32> -> vector<16x640xf32>
    %c0_8 = arith.constant 0 : index
    %c0_9 = arith.constant 0 : index
    %12 = vector.load %arg3[%c0_8, %c0_9] : memref<16x8xf32, #tpu.memory_space<vmem>>, vector<16x8xf32>
    %cst_10 = arith.constant dense<0.000000e+00> : vector<16x640xf32>
    %13 = tpu.matmul %12, %9, %cst_10 {dimension_numbers = #tpu.dot_dimension_numbers<[1], [0], [0], [1], [0, 0, 1, 1], [], []>} : vector<16x8xf32>, vector<8x640xf32>, vector<16x640xf32> -> vector<16x640xf32>
    %14 = vector.extract_strided_slice %11 {offsets = [0, 0], sizes = [16, 384], strides = [1, 1]} : vector<16x640xf32> to vector<16x384xf32>
    %15 = vector.extract_strided_slice %11 {offsets = [0, 384], sizes = [16, 256], strides = [1, 1]} : vector<16x640xf32> to vector<16x256xf32>
    %16 = vector.extract_strided_slice %13 {offsets = [0, 0], sizes = [16, 384], strides = [1, 1]} : vector<16x640xf32> to vector<16x384xf32>
    %17 = vector.extract_strided_slice %13 {offsets = [0, 384], sizes = [16, 256], strides = [1, 1]} : vector<16x640xf32> to vector<16x256xf32>
    %c0_11 = arith.constant 0 : index
    %c0_12 = arith.constant 0 : index
    %18 = vector.load %arg6[%c0_11, %c0_12] : memref<1x384xf32, #tpu.memory_space<vmem>>, vector<1x384xf32>
    %19 = vector.broadcast %18 : vector<1x384xf32> to vector<16x384xf32>
    %20 = arith.cmpf oeq, %14, %19 : vector<16x384xf32>
    %21 = arith.extui %20 : vector<16x384xi1> to vector<16x384xi32>
    %22 = arith.sitofp %21 : vector<16x384xi32> to vector<16x384xf32>
    %23 = vector.broadcast %18 : vector<1x384xf32> to vector<16x384xf32>
    %24 = arith.cmpf oeq, %16, %23 : vector<16x384xf32>
    %25 = arith.extui %24 : vector<16x384xi1> to vector<16x384xi32>
    %26 = arith.sitofp %25 : vector<16x384xi32> to vector<16x384xf32>
    %c0_13 = arith.constant 0 : index
    %c0_14 = arith.constant 0 : index
    %c0_15 = arith.constant 0 : index
    %27 = vector.load %arg7[%c0_13, %c0_14, %c0_15] : memref<2x384x512xf32, #tpu.memory_space<vmem>>, vector<1x384x512xf32>
    %28 = vector.shape_cast %27 : vector<1x384x512xf32> to vector<384x512xf32>
    %cst_16 = arith.constant dense<0.000000e+00> : vector<16x512xf32>
    %29 = tpu.matmul %22, %28, %cst_16 {dimension_numbers = #tpu.dot_dimension_numbers<[1], [0], [0], [1], [0, 0, 1, 1], [], []>} : vector<16x384xf32>, vector<384x512xf32>, vector<16x512xf32> -> vector<16x512xf32>
    %c1 = arith.constant 1 : index
    %c0_17 = arith.constant 0 : index
    %c0_18 = arith.constant 0 : index
    %30 = vector.load %arg7[%c1, %c0_17, %c0_18] : memref<2x384x512xf32, #tpu.memory_space<vmem>>, vector<1x384x512xf32>
    %31 = vector.shape_cast %30 : vector<1x384x512xf32> to vector<384x512xf32>
    %cst_19 = arith.constant dense<0.000000e+00> : vector<16x512xf32>
    %32 = tpu.matmul %26, %31, %cst_19 {dimension_numbers = #tpu.dot_dimension_numbers<[1], [0], [0], [1], [0, 0, 1, 1], [], []>} : vector<16x384xf32>, vector<384x512xf32>, vector<16x512xf32> -> vector<16x512xf32>
    %cst_20 = arith.constant 2.000000e+00 : f32
    %33 = vector.broadcast %cst_20 : f32 to vector<16x256xf32>
    %34 = arith.cmpf oge, %15, %33 : vector<16x256xf32>
    %cst_21 = arith.constant 4.000000e+01 : f32
    %35 = vector.broadcast %cst_21 : f32 to vector<16x256xf32>
    %36 = arith.cmpf ole, %15, %35 : vector<16x256xf32>
    %37 = arith.andi %34, %36 : vector<16x256xi1>
    %38 = arith.extui %37 : vector<16x256xi1> to vector<16x256xi32>
    %39 = arith.sitofp %38 : vector<16x256xi32> to vector<16x256xf32>
    %cst_22 = arith.constant 2.000000e+00 : f32
    %40 = vector.broadcast %cst_22 : f32 to vector<16x256xf32>
    %41 = arith.cmpf oge, %17, %40 : vector<16x256xf32>
    %cst_23 = arith.constant 4.000000e+01 : f32
    %42 = vector.broadcast %cst_23 : f32 to vector<16x256xf32>
    %43 = arith.cmpf ole, %17, %42 : vector<16x256xf32>
    %44 = arith.andi %41, %43 : vector<16x256xi1>
    %45 = arith.extui %44 : vector<16x256xi1> to vector<16x256xi32>
    %46 = arith.sitofp %45 : vector<16x256xi32> to vector<16x256xf32>
    %cst_24 = arith.constant 1.000000e+00 : f32
    %47 = vector.broadcast %cst_24 : f32 to vector<16x256xf32>
    %48 = arith.cmpf oeq, %17, %47 : vector<16x256xf32>
    %49 = arith.extui %48 : vector<16x256xi1> to vector<16x256xi32>
    %50 = arith.sitofp %49 : vector<16x256xi32> to vector<16x256xf32>
    %c0_25 = arith.constant 0 : index
    %c0_26 = arith.constant 0 : index
    %51 = vector.load %arg8[%c0_25, %c0_26] : memref<2x256xf32, #tpu.memory_space<vmem>>, vector<1x256xf32>
    %c1_27 = arith.constant 1 : index
    %c0_28 = arith.constant 0 : index
    %52 = vector.load %arg8[%c1_27, %c0_28] : memref<2x256xf32, #tpu.memory_space<vmem>>, vector<1x256xf32>
    %53 = vector.extract_strided_slice %29 {offsets = [0, 0], sizes = [16, 256], strides = [1, 1]} : vector<16x512xf32> to vector<16x256xf32>
    %54 = arith.addf %3, %53 : vector<16x256xf32>
    %55 = arith.mulf %39, %54 : vector<16x256xf32>
    %56 = vector.extract_strided_slice %29 {offsets = [0, 256], sizes = [16, 256], strides = [1, 1]} : vector<16x512xf32> to vector<16x256xf32>
    %57 = arith.addf %4, %56 : vector<16x256xf32>
    %58 = arith.negf %57 : vector<16x256xf32>
    %59 = math.exp %58 : vector<16x256xf32>
    %cst_29 = arith.constant 1.000000e+00 : f32
    %60 = vector.broadcast %cst_29 : f32 to vector<16x256xf32>
    %61 = arith.addf %60, %59 : vector<16x256xf32>
    %62 = arith.divf %60, %61 : vector<16x256xf32>
    %63 = arith.mulf %55, %62 : vector<16x256xf32>
    %64 = vector.extract_strided_slice %32 {offsets = [0, 0], sizes = [16, 256], strides = [1, 1]} : vector<16x512xf32> to vector<16x256xf32>
    %65 = arith.addf %5, %64 : vector<16x256xf32>
    %66 = arith.mulf %46, %65 : vector<16x256xf32>
    %67 = vector.extract_strided_slice %32 {offsets = [0, 256], sizes = [16, 256], strides = [1, 1]} : vector<16x512xf32> to vector<16x256xf32>
    %68 = arith.addf %6, %67 : vector<16x256xf32>
    %69 = arith.negf %68 : vector<16x256xf32>
    %70 = math.exp %69 : vector<16x256xf32>
    %cst_30 = arith.constant 1.000000e+00 : f32
    %71 = vector.broadcast %cst_30 : f32 to vector<16x256xf32>
    %72 = arith.addf %71, %70 : vector<16x256xf32>
    %73 = arith.divf %71, %72 : vector<16x256xf32>
    %74 = arith.mulf %66, %73 : vector<16x256xf32>
    %75 = arith.addf %63, %74 : vector<16x256xf32>
    %76 = vector.broadcast %51 : vector<1x256xf32> to vector<16x256xf32>
    %77 = arith.addf %7, %76 : vector<16x256xf32>
    %78 = arith.mulf %50, %77 : vector<16x256xf32>
    %79 = vector.broadcast %52 : vector<1x256xf32> to vector<16x256xf32>
    %80 = arith.addf %8, %79 : vector<16x256xf32>
    %81 = arith.negf %80 : vector<16x256xf32>
    %82 = math.exp %81 : vector<16x256xf32>
    %cst_31 = arith.constant 1.000000e+00 : f32
    %83 = vector.broadcast %cst_31 : f32 to vector<16x256xf32>
    %84 = arith.addf %83, %82 : vector<16x256xf32>
    %85 = arith.divf %83, %84 : vector<16x256xf32>
    %86 = arith.mulf %78, %85 : vector<16x256xf32>
    %87 = arith.addf %75, %86 : vector<16x256xf32>
    %88 = vector.shape_cast %87 : vector<16x256xf32> to vector<2x8x256xf32>
    %cst_32 = arith.constant dense<0.000000e+00> : vector<2x256xf32>
    %89 = vector.multi_reduction <add>, %88, %cst_32 [1] : vector<2x8x256xf32> to vector<2x256xf32>
    %cst_33 = arith.constant 0.000000e+00 : f32
    %90 = vector.broadcast %cst_33 : f32 to vector<2x256xf32>
    %91 = arith.maximumf %89, %90 : vector<2x256xf32>
    %c0_34 = arith.constant 0 : index
    %c0_35 = arith.constant 0 : index
    %92 = vector.load %arg9[%c0_34, %c0_35] : memref<2x256xf32, #tpu.memory_space<vmem>>, vector<2x256xf32>
    tpu.vector_store %arg9[%c0_34, %c0_35], %91 {strides = array<i32>} : memref<2x256xf32, #tpu.memory_space<vmem>>, vector<2x256xf32>,
    return
  }
  func.func @transform_0(%arg0: i32) -> (i32, i32) {
    %c0_i32 = arith.constant 0 : i32
    %c0_i32_0 = arith.constant 0 : i32
    return %arg0, %c0_i32 : i32, i32
  }
  func.func @transform_1(%arg0: i32) -> (i32, i32) {
    %c0_i32 = arith.constant 0 : i32
    %c0_i32_0 = arith.constant 0 : i32
    return %arg0, %c0_i32 : i32, i32
  }
  func.func @transform_2(%arg0: i32) -> (i32, i32) {
    %c0_i32 = arith.constant 0 : i32
    %c0_i32_0 = arith.constant 0 : i32
    return %arg0, %c0_i32 : i32, i32
  }
  func.func @transform_3(%arg0: i32) -> (i32, i32) {
    %c0_i32 = arith.constant 0 : i32
    %c0_i32_0 = arith.constant 0 : i32
    %c0_i32_1 = arith.constant 0 : i32
    return %c0_i32, %c0_i32_0 : i32, i32
  }
  func.func @transform_4(%arg0: i32) -> (i32, i32) {
    %c0_i32 = arith.constant 0 : i32
    %c0_i32_0 = arith.constant 0 : i32
    %c0_i32_1 = arith.constant 0 : i32
    return %c0_i32, %c0_i32_0 : i32, i32
  }
  func.func @transform_5(%arg0: i32) -> (i32, i32) {
    %c0_i32 = arith.constant 0 : i32
    %c0_i32_0 = arith.constant 0 : i32
    %c0_i32_1 = arith.constant 0 : i32
    return %c0_i32, %c0_i32_0 : i32, i32
  }
  func.func @transform_6(%arg0: i32) -> (i32, i32, i32) {
    %c0_i32 = arith.constant 0 : i32
    %c0_i32_0 = arith.constant 0 : i32
    %c0_i32_1 = arith.constant 0 : i32
    %c0_i32_2 = arith.constant 0 : i32
    return %c0_i32, %c0_i32_0, %c0_i32_1 : i32, i32, i32
  }
  func.func @transform_7(%arg0: i32) -> (i32, i32) {
    %c0_i32 = arith.constant 0 : i32
    %c0_i32_0 = arith.constant 0 : i32
    %c0_i32_1 = arith.constant 0 : i32
    return %c0_i32, %c0_i32_0 : i32, i32
  }
  func.func @transform_8(%arg0: i32) -> (i32, i32) {
    %c0_i32 = arith.constant 0 : i32
    %c0_i32_0 = arith.constant 0 : i32
    return %arg0, %c0_i32 : i32, i32
  }
}

</mosaic_0001>

<bundles_post_ra>
// kernel: tpu_custom_call.1
= control target key start
LH: loop header
LB: loop body
LE: loop exit
PB: predicated region body
PF: predicated region fallthrough
CT: control target
= control target key end

     0   :  { %13 = vsyncpa [#allocation3], 0  ;;  %s3312_s0 = inlined_call_operand.hbm [shape: f32[16,32], index: 0, kind: input, shape index: {}]   ;;  %s3313_s1 = inlined_call_operand.vmem [shape: f32[16,8], index: 1, kind: input, shape index: {}]   ;;  %s3314_s2 = inlined_call_operand.vmem [shape: f32[16,8], index: 2, kind: input, shape index: {}]   ;;  %s3315_s3 = inlined_call_operand.hbm [shape: f32[32,1536], index: 3, kind: input, shape index: {}]   ;;  %s3316_s4 = inlined_call_operand.hbm [shape: f32[8,640], index: 4, kind: input, shape index: {}]   ;;  %s3317_s5 = inlined_call_operand.hbm [shape: f32[1,384], index: 5, kind: input, shape index: {}]   ;;  %s3318_s6 = inlined_call_operand.hbm [shape: f32[2,384,512], index: 6, kind: input, shape index: {}]   ;;  %s3319_s7 = inlined_call_operand.hbm [shape: f32[2,256], index: 7, kind: input, shape index: {}]   ;;  %s3320_s8 = inlined_call_operand.hbm [shape: f32[2,256], index: 8, kind: output, shape index: {}]  }
   0x1   :  { %14 = vsyncpa [#allocation6], 0 }
   0x2   :  { %15 = vsyncpa [#allocation9], 0 }
   0x3   :  { %16 = vsyncpa [#allocation12], 0 }
   0x4   :  { %17 = vsyncpa [#allocation4], 0  ;;  %s2759_s27 = smov [#allocation5]  }
   0x5   :  { %s39_s28 = sshll.u32 %s2759_s27, 4  ;;  %s40_s28 = int_to_ptr.vmem [resolvable:$true] %s39_s28 }
   0x6   :  { %s2617_s29 = scalar_lea.vmem %s40_s28, 6144  ;;  %p2622_p1 = scmp.lt.s32.totalorder %s40_s28, %s40_s28 }
   0x7   :  { %p2618_p0 = scmp.ne.s32.totalorder %s40_s28, %s2617_s29  ;;  %p2623_p2 = scmp.lt.s32.totalorder %s2617_s29, %s2617_s29 }
   0x9   :  { %p2624_p3 = por %p2623_p2, %p2622_p1 }
   0xb   :  { %p2625_p4 = pnand %p2624_p3, %p2618_p0 }
   0xd   :  { %2628 = shalt.err (!%p2625_p4)
}
   0xe   :  { %s2760_s30 = smov 1536   ;;  %s2761_s9 = smov 96  }
   0xf   :  { %45 = dma.hbm_to_vmem [thread:$0]  %s3315_s3, 6144, %s40_s28, [#allocation6], %s2760_s30, %s2760_s30, %s2761_s9  }
  0x10   :  { %s2762_s12 = smov [#allocation8]   ;;  %s2763_s14 = smov [#allocation2]  }
  0x11   :  { %s62_s13 = sshll.u32 %s2762_s12, 4  ;;  %s23_s15 = sshll.u32 %s2763_s14, 4  ;;  %s63_s13 = int_to_ptr.vmem [resolvable:$true] %s62_s13  ;;  %s24_s15 = int_to_ptr.vmem [resolvable:$true] %s23_s15 }
  0x12   :  { %s2637_s16 = scalar_lea.vmem %s63_s13, 48  ;;  %s2641_s17 = scalar_lea.vmem %s63_s13, 64 }
  0x13   :  { %p2638_p5 = scmp.ne.s32.totalorder %s63_s13, %s2637_s16  ;;  %p2642_p6 = scmp.lt.s32.totalorder %s63_s13, %s63_s13 }
  0x14   :  { %p2643_p7 = scmp.lt.s32.totalorder %s2641_s17, %s2637_s16 }
  0x16   :  { %p2644_p8 = por %p2643_p7, %p2642_p6 }
  0x18   :  { %p2645_p9 = pnand %p2644_p8, %p2638_p5 }
  0x1a   :  { %2648 = shalt.err (!%p2645_p9)
}
  0x1b   :  { %65 = dma.hbm_to_vmem [thread:$0]  %s3317_s5, 48, %s63_s13, [#allocation9]  }
  0x1c   :  { %s2657_s20 = scalar_lea.vmem %s24_s15, 256  ;;  %p2662_p11 = scmp.lt.s32.totalorder %s24_s15, %s24_s15 }
  0x1d   :  { %p2658_p10 = scmp.ne.s32.totalorder %s24_s15, %s2657_s20  ;;  %p2663_p12 = scmp.lt.s32.totalorder %s2657_s20, %s2657_s20 }
  0x1f   :  { %p2664_p13 = por %p2663_p12, %p2662_p11 }
  0x21   :  { %p2665_p0 = pnand %p2664_p13, %p2658_p10 }
  0x23   :  { %2668 = shalt.err (!%p2665_p0)
}
  0x24   :  { %s2764_s3 = smov 128   ;;  %s2765_s21 = smov 8  }
  0x25   :  { %29 = dma.hbm_to_vmem [thread:$0]  %s3312_s0, 256, %s24_s15, [#allocation3], %s2764_s3, %s2764_s3, %s2765_s21  }
  0x26   :  { %s2766_s24 = smov [#allocation7]   ;;  %s2767_s26 = smov [#allocation10]  }
  0x27   :  { %s52_s25 = sshll.u32 %s2766_s24, 4  ;;  %s71_s27 = sshll.u32 %s2767_s26, 4  ;;  %s53_s25 = int_to_ptr.vmem [resolvable:$true] %s52_s25  ;;  %s72_s27 = int_to_ptr.vmem [resolvable:$true] %s71_s27 }
  0x28   :  { %s2677_s5 = scalar_lea.vmem %s53_s25, 640  ;;  %p2682_p2 = scmp.lt.s32.totalorder %s53_s25, %s53_s25 }
  0x29   :  { %p2678_p1 = scmp.ne.s32.totalorder %s53_s25, %s2677_s5  ;;  %p2683_p3 = scmp.lt.s32.totalorder %s2677_s5, %s2677_s5 }
  0x2b   :  { %p2684_p4 = por %p2683_p3, %p2682_p2 }
  0x2d   :  { %p2685_p5 = pnand %p2684_p4, %p2678_p1 }
  0x2f   :  { %2688 = shalt.err (!%p2685_p5)
}
  0x30   :  { %55 = dma.hbm_to_vmem [thread:$0]  %s3316_s4, 640, %s53_s25, [#allocation6]  }
  0x31   :  { %s2697_s30 = scalar_lea.vmem %s72_s27, 49152  ;;  %p2702_p7 = scmp.lt.s32.totalorder %s72_s27, %s72_s27 }
  0x32   :  { %p2698_p6 = scmp.ne.s32.totalorder %s72_s27, %s2697_s30  ;;  %p2703_p8 = scmp.lt.s32.totalorder %s2697_s30, %s2697_s30 }
  0x34   :  { %p2704_p9 = por %p2703_p8, %p2702_p7 }
  0x36   :  { %p2705_p10 = pnand %p2704_p9, %p2698_p6 }
  0x38   :  { %2708 = shalt.err (!%p2705_p10)
}
  0x39   :  { %s2768_s0 = smov 512   ;;  %s2769_s9 = smov 32  }
  0x3a   :  { %77 = dma.hbm_to_vmem [thread:$0]  %s3318_s6, 49152, %s72_s27, [#allocation9], %s2768_s0, %s2768_s0, %s2769_s9  }
  0x3b   :  { %s2770_s12 = smov [#allocation11]  }
  0x3c   :  { %s84_s13 = sshll.u32 %s2770_s12, 4  ;;  %s85_s13 = int_to_ptr.vmem [resolvable:$true] %s84_s13 }
  0x3d   :  { %s2717_s14 = scalar_lea.vmem %s85_s13, 64  ;;  %p2722_p12 = scmp.lt.s32.totalorder %s85_s13, %s85_s13 }
  0x3e   :  { %p2718_p11 = scmp.ne.s32.totalorder %s85_s13, %s2717_s14  ;;  %p2723_p13 = scmp.lt.s32.totalorder %s2717_s14, %s2717_s14 }
  0x40   :  { %p2724_p0 = por %p2723_p13, %p2722_p12 }
  0x42   :  { %p2725_p1 = pnand %p2724_p0, %p2718_p11 }
  0x44   :  { %2728 = shalt.err (!%p2725_p1)
}
  0x45   :  { %87 = dma.hbm_to_vmem [thread:$0]  %s3319_s7, 64, %s85_s13, [#allocation12]  }
  0x46   :  { %2749 = dma.done.wait [#allocation3], 256  }
  0x47   :  { %2750 = vsyncadd [#allocation3], 4294967040 }
  0x48   :  { %2751 = dma.done.wait [#allocation6], 6784  }
  0x49   :  { %2752 = vsyncadd [#allocation6], 4294960512 }
  0x4a   :  { %2753 = dma.done.wait [#allocation9], 49200  }
  0x4b   :  { %2754 = vsyncadd [#allocation9], 4294918096 }
  0x4c   :  { %2755 = dma.done.wait [#allocation12], 64  }
  0x4d   :  { %2756 = vsyncadd [#allocation12], 4294967232  ;;  %v3321_v0 = vmov 0.0   ;;  %v145_v1 = vld [vmem:[#allocation5 + $0x128] sm:$0xff]  ;;  %v147_v2 = vld [vmem:[#allocation5 + $0x138] sm:$0xff]  ;;  %vm156_vm0 = vcmask 261120  }
  0x4e   :  { %227 = vmatprep.mubr.f32.mxu0 %v3321_v0  ;;  %304 = vmatprep.mubr.f32.mxu1 %v3321_v0  ;;  %v144_v3 = vld [vmem:[#allocation5 + $0x120] sm:$0xff]  ;;  %v146_v4 = vld [vmem:[#allocation5 + $0x130] sm:$0xff]  ;;  %v133_v5 = vld [vmem:[#allocation5 + $0xc8] sm:$0xff]  ;;  %vm632_vm1 = vcmask 64512  }
  0x4f   :  { %187 = vmatprep.subr.mxu0 %v145_v1  ;;  %264 = vmatprep.subr.mxu1 %v147_v2  ;;  %v135_v6 = vld [vmem:[#allocation5 + $0xd8] sm:$0xff]  ;;  %v132_v7 = vld [vmem:[#allocation5 + $0xc0] sm:$0xff]  ;;  %v134_v8 = vld [vmem:[#allocation5 + $0xd0] sm:$0xff] }
  0x50   :  { %188 = vmatpush1.msra.mxu0 %v144_v3  ;;  %265 = vmatpush1.msra.mxu1 %v146_v4  ;;  %v121_v9 = vld [vmem:[#allocation5 + $0x68] sm:$0xff]  ;;  %v123_v10 = vld [vmem:[#allocation5 + $0x78] sm:$0xff]  ;;  %v120_v11 = vld [vmem:[#allocation5 + $0x60] sm:$0xff] }
  0x51   :  { %189 = vmatprep.subr.mxu0 %v133_v5  ;;  %266 = vmatprep.subr.mxu1 %v135_v6  ;;  %v122_v12 = vld [vmem:[#allocation5 + $0x70] sm:$0xff]  ;;  %v109_v13 = vld [vmem:[#allocation5 + $0x8] sm:$0xff]  ;;  %v111_v14 = vld [vmem:[#allocation5 + $0x18] sm:$0xff] }
  0x52   :  { %190 = vmatpush1.msra.mxu0 %v132_v7  ;;  %267 = vmatpush1.msra.mxu1 %v134_v8  ;;  %v108_v15 = vld [vmem:[#allocation5] sm:$0xff]  ;;  %v110_v16 = vld [vmem:[#allocation5 + $0x10] sm:$0xff]  ;;  %v149_v18 = vld [vmem:[#allocation5 + $0x148] sm:$0xff] }
  0x53   :  { %191 = vmatprep.subr.mxu0 %v121_v9  ;;  %268 = vmatprep.subr.mxu1 %v123_v10  ;;  %v2840_v17 = vld [vmem:[#allocation2] sm:$0xff]  ;;  %v151_v19 = vld [vmem:[#allocation5 + $0x158] sm:$0xff]  ;;  %v148_v20 = vld [vmem:[#allocation5 + $0x140] sm:$0xff] }
  0x54   :  { %192 = vmatpush1.msra.mxu0 %v120_v11  ;;  %269 = vmatpush1.msra.mxu1 %v122_v12  ;;  %v150_v21 = vld [vmem:[#allocation5 + $0x150] sm:$0xff]  ;;  %v137_v22 = vld [vmem:[#allocation5 + $0xe8] sm:$0xff]  ;;  %v139_v23 = vld [vmem:[#allocation5 + $0xf8] sm:$0xff] }
  0x55   :  { %193 = vmatprep.subr.mxu0 %v109_v13  ;;  %270 = vmatprep.subr.mxu1 %v111_v14  ;;  %v136_v24 = vld [vmem:[#allocation5 + $0xe0] sm:$0xff]  ;;  %v138_v25 = vld [vmem:[#allocation5 + $0xf0] sm:$0xff]  ;;  %v2846_v26 = vld [vmem:[#allocation2 + $0x8] sm:$0xff] }
  0x56   :  { %194 = vmatpush1.msra.mxu0 %v108_v15  ;;  %271 = vmatpush1.msra.mxu1 %v110_v16  ;;  %v125_v27 = vld [vmem:[#allocation5 + $0x88] sm:$0xff]  ;;  %v127_v28 = vld [vmem:[#allocation5 + $0x98] sm:$0xff]  ;;  %v124_v29 = vld [vmem:[#allocation5 + $0x80] sm:$0xff] }
  0x57   :  { %2445 = vmatmul.mubr.msk.f32.vlgmr.msra.gmra.mxu0 %vm156_vm0, %v2840_v17  ;;  %2447 = vmatmul.mubr.msk.f32.vlgmr.msra.gmra.mxu1 %vm156_vm0, %v2840_v17  ;;  %v126_v30 = vld [vmem:[#allocation5 + $0x90] sm:$0xff]  ;;  %v113_v31 = vld [vmem:[#allocation5 + $0x28] sm:$0xff]  ;;  %v115_v32 = vld [vmem:[#allocation5 + $0x38] sm:$0xff] }
  0x58   :  { %341 = vmatprep.subr.mxu0 %v149_v18  ;;  %418 = vmatprep.subr.mxu1 %v151_v19  ;;  %v112_v33 = vld [vmem:[#allocation5 + $0x20] sm:$0xff]  ;;  %v114_v34 = vld [vmem:[#allocation5 + $0x30] sm:$0xff]  ;;  %v153_v35 = vld [vmem:[#allocation5 + $0x168] sm:$0xff] }
  0x59   :  { %342 = vmatpush1.msra.mxu0 %v148_v20  ;;  %419 = vmatpush1.msra.mxu1 %v150_v21  ;;  %v155_v36 = vld [vmem:[#allocation5 + $0x178] sm:$0xff]  ;;  %v152_v37 = vld [vmem:[#allocation5 + $0x160] sm:$0xff]  ;;  %v154_v38 = vld [vmem:[#allocation5 + $0x170] sm:$0xff] }
  0x5a   :  { %343 = vmatprep.subr.mxu0 %v137_v22  ;;  %420 = vmatprep.subr.mxu1 %v139_v23  ;;  %v141_v39 = vld [vmem:[#allocation5 + $0x108] sm:$0xff]  ;;  %v143_v40 = vld [vmem:[#allocation5 + $0x118] sm:$0xff]  ;;  %v140_v41 = vld [vmem:[#allocation5 + $0x100] sm:$0xff] }
  0x5b   :  { %233 = vmatprep.mubr.f32.mxu0 %v3321_v0  ;;  %310 = vmatprep.mubr.f32.mxu1 %v3321_v0  ;;  %v142_v42 = vld [vmem:[#allocation5 + $0x110] sm:$0xff]  ;;  %v129_v43 = vld [vmem:[#allocation5 + $0xa8] sm:$0xff]  ;;  %v131_v44 = vld [vmem:[#allocation5 + $0xb8] sm:$0xff] }
  0x5c   :  { %344 = vmatpush1.msra.mxu0 %v136_v24  ;;  %421 = vmatpush1.msra.mxu1 %v138_v25  ;;  %v128_v45 = vld [vmem:[#allocation5 + $0xa0] sm:$0xff]  ;;  %v130_v46 = vld [vmem:[#allocation5 + $0xb0] sm:$0xff]  ;;  %v117_v47 = vld [vmem:[#allocation5 + $0x48] sm:$0xff] }
  0x5d   :  { %2446 = vmatmul.mubr.msk.f32.gmra.mxu0 %vm156_vm0, %v2846_v26  ;;  %2448 = vmatmul.mubr.msk.f32.gmra.mxu1 %vm156_vm0, %v2846_v26  ;;  %v119_v48 = vld [vmem:[#allocation5 + $0x58] sm:$0xff]  ;;  %v116_v49 = vld [vmem:[#allocation5 + $0x40] sm:$0xff]  ;;  %v118_v50 = vld [vmem:[#allocation5 + $0x50] sm:$0xff] }
  0x5e   :  { %345 = vmatprep.subr.mxu0 %v125_v27  ;;  %422 = vmatprep.subr.mxu1 %v127_v28  ;;  %v628_v51 = vld [vmem:[#allocation7 + $0x18] sm:$0xff]  ;;  %v627_v52 = vld [vmem:[#allocation7 + $0x10] sm:$0xff]  ;;  %v626_v53 = vld [vmem:[#allocation7 + $0x8] sm:$0xff] }
  0x5f   :  { %346 = vmatpush1.msra.mxu0 %v124_v29  ;;  %423 = vmatpush1.msra.mxu1 %v126_v30  ;;  %v625_v54 = vld [vmem:[#allocation7] sm:$0xff]  ;;  %v630_v56 = vld [vmem:[%s3313_s1] sm:$0xff]  ;;  %v631_v57 = vld [vmem:[%s3313_s1 + $0x8] sm:$0xff] }
  0x60   :  { %347 = vmatprep.subr.mxu0 %v113_v31  ;;  %424 = vmatprep.subr.mxu1 %v115_v32  ;;  %v629_v55 = vld [vmem:[#allocation7 + $0x20] sm:$0xff]  ;;  %v868_v58 = vld [vmem:[%s3314_s2] sm:$0xff]  ;;  %v869_v61 = vld [vmem:[%s3314_s2 + $0x8] sm:$0xff]  ;;  %s2774_s2 = smov [#allocation13]  }
  0x61   :  { %348 = vmatpush1.msra.mxu0 %v112_v33  ;;  %381 = vmatprep.mubr.f32.mxu0 %v3321_v0  ;;  %v1219_v59 = vld [vmem:[#allocation10 + $0x1e8] sm:$0xff]  ;;  %v1218_v62 = vld [vmem:[#allocation10 + $0x1e0] sm:$0xff]  ;;  %s2433_s3 = sshll.u32 %s2774_s2, 4  ;;  %s2434_s3 = int_to_ptr.vmem [resolvable:$true] %s2433_s3 }
  0x62   :  { %425 = vmatpush1.msra.mxu1 %v114_v34  ;;  %458 = vmatprep.mubr.f32.mxu1 %v3321_v0  ;;  %v1347_v60 = vld [vmem:[#allocation10 + $0x5e8] sm:$0xff]  ;;  %v1214_v1 = vld [vmem:[#allocation10 + $0x1c0] sm:$0xff]  ;;  %s2729_s21 = scalar_lea.vmem %s2434_s3, 64  ;;  %p2734_p3 = scmp.lt.s32.totalorder %s2434_s3, %s2434_s3 }
  0x63   :  { %2449 = vmatmul.mubr.msk.f32.vlgmr.msra.gmra.mxu0 %vm156_vm0, %v2840_v17  ;;  %2451 = vmatmul.mubr.msk.f32.vlgmr.msra.gmra.mxu1 %vm156_vm0, %v2840_v17  ;;  %v1215_v63 = vld [vmem:[#allocation10 + $0x1c8] sm:$0xff]  ;;  %v1346_v2 = vld [vmem:[#allocation10 + $0x5e0] sm:$0xff]  ;;  %p2730_p2 = scmp.ne.s32.totalorder %s2434_s3, %s2729_s21  ;;  %p2735_p4 = scmp.lt.s32.totalorder %s2729_s21, %s2729_s21 }
  0x64   :  { %495 = vmatprep.subr.mxu0 %v153_v35  ;;  %572 = vmatprep.subr.mxu1 %v155_v36  ;;  %v1211_v3 = vld [vmem:[#allocation10 + $0x1a8] sm:$0xff]  ;;  %v1210_v5 = vld [vmem:[#allocation10 + $0x1a0] sm:$0xff] }
  0x65   :  { %496 = vmatpush1.msra.mxu0 %v152_v37  ;;  %573 = vmatpush1.msra.mxu1 %v154_v38  ;;  %v1343_v4 = vld [vmem:[#allocation10 + $0x5c8] sm:$0xff]  ;;  %v1342_v6 = vld [vmem:[#allocation10 + $0x5c0] sm:$0xff]  ;;  %p2736_p5 = por %p2735_p4, %p2734_p3 }
  0x66   :  { %497 = vmatprep.subr.mxu0 %v141_v39  ;;  %574 = vmatprep.subr.mxu1 %v143_v40  ;;  %v1207_v7 = vld [vmem:[#allocation10 + $0x188] sm:$0xff]  ;;  %v1206_v9 = vld [vmem:[#allocation10 + $0x180] sm:$0xff] }
  0x67   :  { %387 = vmatprep.mubr.f32.mxu0 %v3321_v0  ;;  %464 = vmatprep.mubr.f32.mxu1 %v3321_v0  ;;  %v1339_v8 = vld [vmem:[#allocation10 + $0x5a8] sm:$0xff]  ;;  %v1338_v10 = vld [vmem:[#allocation10 + $0x5a0] sm:$0xff]  ;;  %p2737_p6 = pnand %p2736_p5, %p2730_p2 }
  0x68   :  { %498 = vmatpush1.msra.mxu0 %v140_v41  ;;  %575 = vmatpush1.msra.mxu1 %v142_v42  ;;  %v1203_v11 = vld [vmem:[#allocation10 + $0x168] sm:$0xff]  ;;  %v1202_v13 = vld [vmem:[#allocation10 + $0x160] sm:$0xff] }
  0x69   :  { %2450 = vmatmul.mubr.msk.f32.gmra.mxu0 %vm156_vm0, %v2846_v26  ;;  %2452 = vmatmul.mubr.msk.f32.gmra.mxu1 %vm156_vm0, %v2846_v26  ;;  %v1335_v12 = vld [vmem:[#allocation10 + $0x588] sm:$0xff]  ;;  %v1198_v15 = vld [vmem:[#allocation10 + $0x140] sm:$0xff] }
  0x6a   :  { %499 = vmatprep.subr.mxu0 %v129_v43  ;;  %576 = vmatprep.subr.mxu1 %v131_v44  ;;  %v1199_v14 = vld [vmem:[#allocation10 + $0x148] sm:$0xff]  ;;  %v1190_v19 = vld [vmem:[#allocation10 + $0x100] sm:$0xff] }
  0x6b   :  { %500 = vmatpush1.msra.mxu0 %v128_v45  ;;  %577 = vmatpush1.msra.mxu1 %v130_v46  ;;  %v1195_v16 = vld [vmem:[#allocation10 + $0x128] sm:$0xff]  ;;  %v1186_v21 = vld [vmem:[#allocation10 + $0xe0] sm:$0xff] }
  0x6c   :  { %501 = vmatprep.subr.mxu0 %v117_v47  ;;  %578 = vmatprep.subr.mxu1 %v119_v48  ;;  %v1191_v18 = vld [vmem:[#allocation10 + $0x108] sm:$0xff]  ;;  %v1182_v23 = vld [vmem:[#allocation10 + $0xc0] sm:$0xff] }
  0x6d   :  { %502 = vmatpush1.msra.mxu0 %v116_v49  ;;  %535 = vmatprep.mubr.f32.mxu0 %v3321_v0  ;;  %v1187_v20 = vld [vmem:[#allocation10 + $0xe8] sm:$0xff]  ;;  %v1178_v25 = vld [vmem:[#allocation10 + $0xa0] sm:$0xff] }
  0x6e   :  { %579 = vmatpush1.msra.mxu1 %v118_v50  ;;  %612 = vmatprep.mubr.f32.mxu1 %v3321_v0  ;;  %v1183_v22 = vld [vmem:[#allocation10 + $0xc8] sm:$0xff]  ;;  %v1174_v29 = vld [vmem:[#allocation10 + $0x80] sm:$0xff] }
  0x6f   :  { %2453 = vmatmul.mubr.msk.f32.vlgmr.msra.gmra.mxu0 %vm156_vm0, %v2840_v17  ;;  %2455 = vmatmul.mubr.msk.f32.vlgmr.msra.gmra.mxu1 %vm156_vm0, %v2840_v17  ;;  %v1194_v17 = vld [vmem:[#allocation10 + $0x120] sm:$0xff]  ;;  %v1179_v24 = vld [vmem:[#allocation10 + $0xa8] sm:$0xff] }
  0x70   :  { %746 = vmatprep.subr.mxu1 %v628_v51  ;;  %541 = vmatprep.mubr.f32.mxu0 %v3321_v0  ;;  %v1175_v27 = vld [vmem:[#allocation10 + $0x88] sm:$0xff]  ;;  %v1330_v30 = vld [vmem:[#allocation10 + $0x560] sm:$0xff] }
  0x71   :  { %747 = vmatpush1.msra.mxu1 %v627_v52  ;;  %618 = vmatprep.mubr.f32.mxu1 %v3321_v0  ;;  %v1331_v28 = vld [vmem:[#allocation10 + $0x568] sm:$0xff]  ;;  %v1170_v33 = vld [vmem:[#allocation10 + $0x60] sm:$0xff] }
  0x72   :  { %669 = vmatprep.subr.mxu0 %v626_v53  ;;  %906 = vmatprep.subr.mxu1 %v626_v53  ;;  %v1171_v31 = vld [vmem:[#allocation10 + $0x68] sm:$0xff]  ;;  %v1166_v35 = vld [vmem:[#allocation10 + $0x40] sm:$0xff] }
  0x73   :  { %2454 = vmatmul.mubr.msk.f32.gmra.mxu0 %vm156_vm0, %v2846_v26  ;;  %2456 = vmatmul.mubr.msk.f32.gmra.mxu1 %vm156_vm0, %v2846_v26  ;;  %v1334_v26 = vld [vmem:[#allocation10 + $0x580] sm:$0xff]  ;;  %v1327_v32 = vld [vmem:[#allocation10 + $0x548] sm:$0xff] }
  0x74   :  { %670 = vmatpush1.msra.mxu0 %v625_v54  ;;  %703 = vmatprep.mubr.f32.mxu0 %v3321_v0  ;;  %v1167_v34 = vld [vmem:[#allocation10 + $0x48] sm:$0xff]  ;;  %v1326_v36 = vld [vmem:[#allocation10 + $0x540] sm:$0xff] }
  0x75   :  { %780 = vmatprep.mubr.f32.mxu1 %v3321_v0  ;;  %2535 = vmatprep.subr.mxu0 %v629_v55  ;;  %v1163_v37 = vld [vmem:[#allocation10 + $0x28] sm:$0xff]  ;;  %v1162_v39 = vld [vmem:[#allocation10 + $0x20] sm:$0xff] }
  0x76   :  { %v1323_v38 = vld [vmem:[#allocation10 + $0x528] sm:$0xff]  ;;  %v1322_v40 = vld [vmem:[#allocation10 + $0x520] sm:$0xff] }
  0x77   :  { %2457 = vmatmul.mubr.msk.f32.vlgmr.msra.gmra.mxu0 %vm632_vm1, %v630_v56  ;;  %2459 = vmatmul.mubr.msk.f32.vlgmr.msra.gmra.mxu1 %vm632_vm1, %v630_v56  ;;  %v1159_v41 = vld [vmem:[#allocation10 + $0x8] sm:$0xff]  ;;  %v1158_v43 = vld [vmem:[#allocation10] sm:$0xff] }
  0x78   :  { %709 = vmatprep.mubr.f32.mxu0 %v3321_v0  ;;  %786 = vmatprep.mubr.f32.mxu1 %v3321_v0  ;;  %v1319_v42 = vld [vmem:[#allocation10 + $0x508] sm:$0xff]  ;;  %v1282_v45 = vld [vmem:[#allocation10 + $0x3e0] sm:$0xff] }
  0x79   :  { %907 = vmatpush1.msra.mxu1 %v625_v54  ;;  %2536 = vmatpush3.msra.mxu0 %v629_v55  ;;  %v1283_v44 = vld [vmem:[#allocation10 + $0x3e8] sm:$0xff]  ;;  %v1318_v46 = vld [vmem:[#allocation10 + $0x500] sm:$0xff] }
  0x7a   :  { %983 = vmatprep.subr.mxu0 %v628_v51  ;;  %2540 = vmatprep.subr.mxu1 %v629_v55  ;;  %v1279_v47 = vld [vmem:[#allocation10 + $0x3c8] sm:$0xff]  ;;  %v1278_v49 = vld [vmem:[#allocation10 + $0x3c0] sm:$0xff] }
  0x7b   :  { %2458 = vmatmul.mubr.msk.f32.gmra.mxu0 %vm632_vm1, %v631_v57  ;;  %2460 = vmatmul.mubr.msk.f32.gmra.mxu1 %vm632_vm1, %v631_v57  ;;  %v1315_v48 = vld [vmem:[#allocation10 + $0x4e8] sm:$0xff]  ;;  %v1314_v50 = vld [vmem:[#allocation10 + $0x4e0] sm:$0xff] }
  0x7c   :  { %940 = vmatprep.mubr.f32.mxu1 %v3321_v0  ;;  %2537 = vmatprep.mubr.msk.f32.mxu0 %vm632_vm1, %v630_v56  ;;  %v1275_v51 = vld [vmem:[#allocation10 + $0x3a8] sm:$0xff]  ;;  %v1274_v53 = vld [vmem:[#allocation10 + $0x3a0] sm:$0xff] }
  0x7d   :  { %v1271_v54 = vld [vmem:[#allocation10 + $0x388] sm:$0xff]  ;;  %v1310_v56 = vld [vmem:[#allocation10 + $0x4c0] sm:$0xff] }
  0x7f   :  { %2463 = vmatmul.mubr.msk.f32.vlgmr.msra.gmra.mxu1 %vm632_vm1, %v868_v58  ;;  %2538 = vmatmul.mubr.msk.f32.vlgmr.msra.gmra.mxu0 %vm632_vm1, %v631_v57  ;;  %v1267_v57 = vld [vmem:[#allocation10 + $0x368] sm:$0xff] }
  0x80   :  { %946 = vmatprep.mubr.f32.mxu1 %v3321_v0  ;;  %984 = vmatpush1.msra.mxu0 %v627_v52  ;;  %v1311_v52 = vld [vmem:[#allocation10 + $0x4c8] sm:$0xff] }
  0x81   :  { %1017 = vmatprep.mubr.f32.mxu0 %v3321_v0  ;;  %2541 = vmatpush3.msra.mxu1 %v629_v55  ;;  %v1270_v55 = vld [vmem:[#allocation10 + $0x380] sm:$0xff] }
  0x82   :  { %1350 = vmatprep.subr.mxu0 %v1219_v59  ;;  %1427 = vmatprep.subr.mxu1 %v1347_v60  ;;  %v1266_v59 = vld [vmem:[#allocation10 + $0x360] sm:$0xff] }
  0x83   :  { %2464 = vmatmul.mubr.msk.f32.gmra.mxu1 %vm632_vm1, %v869_v61  ;;  %2465 = vmatmul.mubr.msk.f32.vlgmr.msra.gmra.mxu0 %vm632_vm1, %v868_v58  ;;  %v1306_v60 = vld [vmem:[#allocation10 + $0x4a0] sm:$0xff] }
  0x84   :  { %2542 = vmatprep.mubr.msk.f32.mxu1 %vm632_vm1, %v868_v58  ;;  %1023 = vmatprep.mubr.f32.mxu0 %v3321_v0  ;;  %v1307_v58 = vld [vmem:[#allocation10 + $0x4a8] sm:$0xff] }
  0x85   :  { %1351 = vmatpush1.msra.mxu0 %v1218_v62  ;;  %v1303_v62 = vld [vmem:[#allocation10 + $0x488] sm:$0xff] }
  0x86   :  { %1352 = vmatprep.subr.mxu0 %v1215_v63  ;;  %v1262_v63 = vld [vmem:[#allocation10 + $0x340] sm:$0xff] }
  0x87   :  { %2543 = vmatmul.mubr.msk.f32.vlgmr.msra.gmra.mxu1 %vm632_vm1, %v869_v61  ;;  %2466 = vmatmul.mubr.msk.f32.gmra.mxu0 %vm632_vm1, %v869_v61  ;;  %v1263_v61 = vld [vmem:[#allocation10 + $0x348] sm:$0xff] }
  0x88   :  { %1353 = vmatpush1.msra.mxu0 %v1214_v1  ;;  %1428 = vmatpush1.msra.mxu1 %v1346_v2  ;;  %v1259_v1 = vld [vmem:[#allocation10 + $0x328] sm:$0xff]  ;;  %v1302_v2 = vld [vmem:[#allocation10 + $0x480] sm:$0xff] }
  0x89   :  { %1354 = vmatprep.subr.mxu0 %v1211_v3  ;;  %1429 = vmatprep.subr.mxu1 %v1343_v4  ;;  %v1258_v3 = vld [vmem:[#allocation10 + $0x320] sm:$0xff]  ;;  %v1299_v4 = vld [vmem:[#allocation10 + $0x468] sm:$0xff] }
  0x8a   :  { %1355 = vmatpush1.msra.mxu0 %v1210_v5  ;;  %1430 = vmatpush1.msra.mxu1 %v1342_v6  ;;  %v1255_v5 = vld [vmem:[#allocation10 + $0x308] sm:$0xff]  ;;  %v1298_v6 = vld [vmem:[#allocation10 + $0x460] sm:$0xff] }
  0x8b   :  { %1356 = vmatprep.subr.mxu0 %v1207_v7  ;;  %1431 = vmatprep.subr.mxu1 %v1339_v8  ;;  %v1254_v7 = vld [vmem:[#allocation10 + $0x300] sm:$0xff]  ;;  %v1295_v8 = vld [vmem:[#allocation10 + $0x448] sm:$0xff] }
  0x8c   :  { %1357 = vmatpush1.msra.mxu0 %v1206_v9  ;;  %1432 = vmatpush1.msra.mxu1 %v1338_v10  ;;  %v1251_v9 = vld [vmem:[#allocation10 + $0x2e8] sm:$0xff]  ;;  %v1294_v10 = vld [vmem:[#allocation10 + $0x440] sm:$0xff] }
  0x8d   :  { %1358 = vmatprep.subr.mxu0 %v1203_v11  ;;  %1433 = vmatprep.subr.mxu1 %v1335_v12  ;;  %v1250_v11 = vld [vmem:[#allocation10 + $0x2e0] sm:$0xff]  ;;  %v1291_v12 = vld [vmem:[#allocation10 + $0x428] sm:$0xff] }
  0x8e   :  { %1359 = vmatpush1.msra.mxu0 %v1202_v13  ;;  %1491 = vmatprep.mubr.f32.mxu1 %v3321_v0  ;;  %v1247_v13 = vld [vmem:[#allocation10 + $0x2c8] sm:$0xff] }
  0x8f   :  { %1360 = vmatprep.subr.mxu0 %v1199_v14  ;;  %1434 = vmatpush1.msra.mxu1 %v1334_v26  ;;  %v1290_v14 = vld [vmem:[#allocation10 + $0x420] sm:$0xff] }
  0x90   :  { %1361 = vmatpush1.msra.mxu0 %v1198_v15  ;;  %1435 = vmatprep.subr.mxu1 %v1331_v28  ;;  %v1246_v15 = vld [vmem:[#allocation10 + $0x2c0] sm:$0xff] }
  0x91   :  { %1362 = vmatprep.subr.mxu0 %v1195_v16  ;;  %1436 = vmatpush1.msra.mxu1 %v1330_v30  ;;  %v1287_v16 = vld [vmem:[#allocation10 + $0x408] sm:$0xff]  ;;  %v1230_v26 = vld [vmem:[#allocation10 + $0x240] sm:$0xff] }
  0x92   :  { %1363 = vmatpush1.msra.mxu0 %v1194_v17  ;;  %1437 = vmatprep.subr.mxu1 %v1327_v32  ;;  %v1243_v17 = vld [vmem:[#allocation10 + $0x2a8] sm:$0xff]  ;;  %v1226_v28 = vld [vmem:[#allocation10 + $0x220] sm:$0xff] }
  0x93   :  { %1364 = vmatprep.subr.mxu0 %v1191_v18  ;;  %1438 = vmatpush1.msra.mxu1 %v1326_v36  ;;  %v1286_v18 = vld [vmem:[#allocation10 + $0x400] sm:$0xff] }
  0x94   :  { %1365 = vmatpush1.msra.mxu0 %v1190_v19  ;;  %1439 = vmatprep.subr.mxu1 %v1323_v38  ;;  %v1242_v19 = vld [vmem:[#allocation10 + $0x2a0] sm:$0xff] }
  0x95   :  { %1366 = vmatprep.subr.mxu0 %v1187_v20  ;;  %1440 = vmatpush1.msra.mxu1 %v1322_v40  ;;  %v1221_v20 = vld [vmem:[#allocation10 + $0x1f8] sm:$0xff]  ;;  %v1222_v30 = vld [vmem:[#allocation10 + $0x200] sm:$0xff]  ;;  %v1107_v40 = vlaneseq }
  0x96   :  { %1367 = vmatpush1.msra.mxu0 %v1186_v21  ;;  %1441 = vmatprep.subr.mxu1 %v1319_v42  ;;  %v1239_v21 = vld [vmem:[#allocation10 + $0x288] sm:$0xff] }
  0x97   :  { %1368 = vmatprep.subr.mxu0 %v1183_v22  ;;  %1442 = vmatpush1.msra.mxu1 %v1318_v46  ;;  %v1238_v22 = vld [vmem:[#allocation10 + $0x280] sm:$0xff] }
  0x98   :  { %1369 = vmatpush1.msra.mxu0 %v1182_v23  ;;  %1443 = vmatprep.subr.mxu1 %v1315_v48  ;;  %v1235_v23 = vld [vmem:[#allocation10 + $0x268] sm:$0xff] }
  0x99   :  { %1370 = vmatprep.subr.mxu0 %v1179_v24  ;;  %1444 = vmatpush1.msra.mxu1 %v1314_v50  ;;  %v1234_v24 = vld [vmem:[#allocation10 + $0x260] sm:$0xff] }
  0x9a   :  { %1371 = vmatpush1.msra.mxu0 %v1178_v25  ;;  %1445 = vmatprep.subr.mxu1 %v1311_v52  ;;  %v1231_v25 = vld [vmem:[#allocation10 + $0x248] sm:$0xff]  ;;  %v2213_v50 = vld [vmem:[#allocation11 + $0x1] ss:$2 sm:$0x3] }
  0x9b   :  { %1372 = vmatprep.subr.mxu0 %v1175_v27  ;;  %1446 = vmatpush1.msra.mxu1 %v1310_v56  ;;  %v1227_v27 = vld [vmem:[#allocation10 + $0x228] sm:$0xff] }
  0x9c   :  { %1373 = vmatpush1.msra.mxu0 %v1174_v29  ;;  %1447 = vmatprep.subr.mxu1 %v1307_v58  ;;  %v1223_v29 = vld [vmem:[#allocation10 + $0x208] sm:$0xff] }
  0x9d   :  { %1374 = vmatprep.subr.mxu0 %v1171_v31  ;;  %1448 = vmatpush1.msra.mxu1 %v1306_v60  ;;  %v1349_v31 = vld [vmem:[#allocation10 + $0x5f8] sm:$0xff] }
  0x9e   :  { %1375 = vmatpush1.msra.mxu0 %v1170_v33  ;;  %1449 = vmatprep.subr.mxu1 %v1303_v62 }
  0x9f   :  { %1376 = vmatprep.subr.mxu0 %v1167_v34  ;;  %1450 = vmatpush1.msra.mxu1 %v1302_v2 }
  0xa0   :  { %1377 = vmatpush1.msra.mxu0 %v1166_v35  ;;  %1451 = vmatprep.subr.mxu1 %v1299_v4 }
  0xa1   :  { %1378 = vmatprep.subr.mxu0 %v1163_v37  ;;  %1452 = vmatpush1.msra.mxu1 %v1298_v6 }
  0xa2   :  { %1379 = vmatpush1.msra.mxu0 %v1162_v39  ;;  %1453 = vmatprep.subr.mxu1 %v1295_v8 }
  0xa3   :  { %1380 = vmatprep.subr.mxu0 %v1159_v41  ;;  %1454 = vmatpush1.msra.mxu1 %v1294_v10 }
  0xa4   :  { %1381 = vmatpush1.msra.mxu0 %v1158_v43  ;;  %1455 = vmatprep.subr.mxu1 %v1291_v12  ;;  %v2931_v43 = vshrl.u32 %v1107_v40, 7  ;;  %v1345_v40 = vld [vmem:[#allocation10 + $0x5d8] sm:$0xff] }
  0xa5   :  { %1382 = vmatprep.subr.mxu0 %v1283_v44  ;;  %1456 = vmatpush1.msra.mxu1 %v1290_v14 }
  0xa6   :  { %1383 = vmatpush2.msra.mxu0 %v1282_v45  ;;  %1457 = vmatprep.subr.mxu1 %v1287_v16  ;;  %v1109_v46 = vsub.s32 0, %v2931_v43  ;;  %v1117_v60 = vsub.s32 2, %v2931_v43 }
  0xa7   :  { %1384 = vmatprep.subr.mxu0 %v1279_v47  ;;  %1458 = vmatpush1.msra.mxu1 %v1286_v18 }
  0xa8   :  { %1385 = vmatpush2.msra.mxu0 %v1278_v49  ;;  %1504 = vmatprep.subr.mxu1 %v1221_v20  ;;  %v2211_v49 = vld [vmem:[#allocation11] ss:$2 sm:$0x3] }
  0xa9   :  { %1386 = vmatprep.subr.mxu0 %v1275_v51  ;;  %v1113_v51 = vsub.s32 1, %v2931_v43 }
  0xaa   :  { %1387 = vmatpush2.msra.mxu0 %v1274_v53 }
  0xab   :  { %1388 = vmatprep.subr.mxu0 %v1271_v54  ;;  %v2302_v54 = vrot.slane %v2211_v49, %v1109_v46  ;;  %v2306_v56 = vrot.slane %v2211_v49, %v1113_v51  ;;  %v1209_v49 = vld [vmem:[#allocation10 + $0x198] sm:$0xff] }
  0xac   :  { %1389 = vmatpush2.msra.mxu0 %v1270_v55  ;;  %v2321_v55 = vrot.slane %v2213_v50, %v1109_v46 }
  0xad   :  { %1390 = vmatprep.subr.mxu0 %v1267_v57  ;;  %v2325_v57 = vrot.slane %v2213_v50, %v1113_v51  ;;  %v1344_v50 = vld [vmem:[#allocation10 + $0x5d0] sm:$0xff] }
  0xae   :  { %1391 = vmatpush2.msra.mxu0 %v1266_v59 }
  0xaf   :  { %1392 = vmatprep.subr.mxu0 %v1263_v61 }
  0xb0   :  { %1393 = vmatpush2.msra.mxu0 %v1262_v63  ;;  %v1105_v63 = vld [vmem:[#allocation8] sm:$0x7] }
  0xb1   :  { %1394 = vmatprep.subr.mxu0 %v1259_v1  ;;  %v2952_v8 = vrot.slane %v1105_v63, %v1117_v60  ;;  %v2956_v14 = vrot.slane %v1105_v63, %v1109_v46  ;;  %v1340_v60 = vld [vmem:[#allocation10 + $0x5b0] sm:$0xff] }
  0xb2   :  { %1395 = vmatpush2.msra.mxu0 %v1258_v3 }
  0xb3   :  { %1396 = vmatprep.subr.mxu0 %v1255_v5 }
  0xb4   :  { %1397 = vmatpush2.msra.mxu0 %v1254_v7 }
  0xb5   :  { %1398 = vmatprep.subr.mxu0 %v1251_v9 }
  0xb6   :  { %1399 = vmatpush2.msra.mxu0 %v1250_v11 }
  0xb7   :  { %1400 = vmatprep.subr.mxu0 %v1247_v13 }
  0xb8   :  { %1401 = vmatpush2.msra.mxu0 %v1246_v15  ;;  %v2958_v15 = vrot.slane %v1105_v63, %v1113_v51 }
  0xb9   :  { %1402 = vmatprep.subr.mxu0 %v1243_v17 }
  0xba   :  { %1403 = vmatpush2.msra.mxu0 %v1242_v19 }
  0xbb   :  { %1404 = vmatprep.subr.mxu0 %v1239_v21  ;;  %v1220_v21 = vld [vmem:[#allocation10 + $0x1f0] sm:$0xff] }
  0xbc   :  { %1405 = vmatpush2.msra.mxu0 %v1238_v22 }
  0xbd   :  { %1406 = vmatprep.subr.mxu0 %v1235_v23  ;;  %v1217_v23 = vld [vmem:[#allocation10 + $0x1d8] sm:$0xff] }
  0xbe   :  { %1407 = vmatpush2.msra.mxu0 %v1234_v24 }
  0xbf   :  { %1408 = vmatprep.subr.mxu0 %v1231_v25 }
  0xc0   :  { %1409 = vmatpush2.msra.mxu0 %v1230_v26  ;;  %v3323_v26 = vmov 1.0  }
  0xc1   :  { %1410 = vmatprep.subr.mxu0 %v1227_v27  ;;  %v1216_v27 = vld [vmem:[#allocation10 + $0x1d0] sm:$0xff] }
  0xc2   :  { %1411 = vmatpush2.msra.mxu0 %v1226_v28  ;;  %v1213_v28 = vld [vmem:[#allocation10 + $0x1b8] sm:$0xff] }
  0xc3   :  { %1412 = vmatprep.subr.mxu0 %v1223_v29  ;;  %v1348_v29 = vld [vmem:[#allocation10 + $0x5f0] sm:$0xff] }
  0xc4   :  { %1413 = vmatpush2.msra.mxu0 %v1222_v30 }
  0xc5   :  { %1581 = vmatprep.subr.mxu0 %v1349_v31  ;;  %v1212_v31 = vld [vmem:[#allocation10 + $0x1b0] sm:$0xff] }
 0x117   :  { %v2911_v32 = vpop.f32.mrf.mxu0  ;;  %v2913_v33 = vpop.f32.mrf.mxu1 }
 0x119   :  { %v2915_v34 = vpop.f32.mrf.mxu0  ;;  %v2917_v35 = vpop.f32.mrf.mxu1 }
 0x11d   :  { %v2919_v36 = vpop.f32.mrf.mxu0  ;;  %v2921_v37 = vpop.f32.mrf.mxu1 }
 0x11f   :  { %v2923_v38 = vpop.f32.mrf.mxu0  ;;  %v2925_v39 = vpop.f32.mrf.mxu1 }
 0x123   :  { %v2927_v41 = vpop.f32.mrf.mxu0  ;;  %v2929_v42 = vpop.f32.mrf.mxu1 }
 0x125   :  { %v2933_v44 = vpop.f32.mrf.mxu0  ;;  %v2935_v45 = vpop.f32.mrf.mxu1 }
 0x129   :  { %v2938_v47 = vpop.f32.mrf.mxu0  ;;  %v2940_v48 = vpop.f32.mrf.mxu1 }
 0x12b   :  { %v2943_v52 = vpop.f32.mrf.mxu0  ;;  %v2945_v53 = vpop.f32.mrf.mxu1 }
 0x12f   :  { %v537_v58 = vpop.f32.mrf.mxu0  ;;  %v614_v59 = vpop.f32.mrf.mxu1 }
 0x130   :  { %v2948_v61 = vadd.f32 %v2302_v54, %v537_v58  ;;  %v2328_v62 = vadd.f32 %v2321_v55, %v614_v59 }
 0x131   :  { %v539_v1 = vpop.f32.mrf.mxu0  ;;  %v616_v2 = vpop.f32.mrf.mxu1 }
 0x132   :  { %v2525_v3 = vmul.f32 -1.442695, %v2328_v62  ;;  %v2950_v4 = vadd.f32 %v2306_v56, %v539_v1  ;;  %v2329_v5 = vadd.f32 %v2325_v57, %v616_v2  ;;  %v1204_v62 = vld [vmem:[#allocation10 + $0x170] sm:$0xff]  ;;  %v1337_v1 = vld [vmem:[#allocation10 + $0x598] sm:$0xff] }
 0x133   :  { %v543_v6 = vpop.f32.mrf.mxu0  ;;  %v620_v7 = vpop.f32.mrf.mxu1  ;;  %v1201_v2 = vld [vmem:[#allocation10 + $0x158] sm:$0xff] }
 0x134   :  { %2561 = vpow2.f32 %v2525_v3  ;;  %v2526_v9 = vmul.f32 -1.442695, %v2329_v5  ;;  %v2954_v10 = vadd.f32 %v2302_v54, %v543_v6  ;;  %v2330_v11 = vadd.f32 %v2321_v55, %v620_v7  ;;  %v1208_v54 = vld [vmem:[#allocation10 + $0x190] sm:$0xff] }
 0x135   :  { %v545_v12 = vpop.f32.mrf.mxu0  ;;  %v622_v13 = vpop.f32.mrf.mxu1  ;;  %v1336_v7 = vld [vmem:[#allocation10 + $0x590] sm:$0xff] }
 0x136   :  { %2563 = vpow2.f32 %v2526_v9  ;;  %v2527_v16 = vmul.f32 -1.442695, %v2330_v11  ;;  %v2960_v17 = vadd.f32 %v2306_v56, %v545_v12  ;;  %v2331_v18 = vadd.f32 %v2325_v57, %v622_v13  ;;  %v1341_v56 = vld [vmem:[#allocation10 + $0x5b8] sm:$0xff]  ;;  %v1200_v9 = vld [vmem:[#allocation10 + $0x150] sm:$0xff] }
 0x137   :  { %v2962_v19 = vpop.f32.mrf.mxu0  ;;  %v2964_v20 = vpop.f32.mrf.mxu1  ;;  %v1205_v57 = vld [vmem:[#allocation10 + $0x178] sm:$0xff] }
 0x138   :  { %2565 = vpow2.f32 %v2527_v16  ;;  %v2528_v22 = vmul.f32 -1.442695, %v2331_v18  ;;  %vm1124_vm2 = vcmp.eq.f32.partialorder %v2964_v20, %v2952_v8  ;;  %vm1122_vm3 = vcmp.eq.f32.partialorder %v2962_v19, %v2956_v14  ;;  %v1333_v12 = vld [vmem:[#allocation10 + $0x578] sm:$0xff]  ;;  %v1707_v20 = vld [vmem:[#allocation10 + $0x780] sm:$0xff]  ;;  %v1840_v19 = vld [vmem:[#allocation10 + $0xba8] sm:$0xff] }
 0x139   :  { %v2970_v24 = vpop.f32.mrf.mxu0  ;;  %v2972_v25 = vpop.f32.mrf.mxu1  ;;  %2485 = vmatmul.mubr.msk.f32.vlgmr.msra.gmra.mxu1 %vm1124_vm2, %v3323_v26  ;;  %v1197_v13 = vld [vmem:[#allocation10 + $0x138] sm:$0xff] }
 0x13a   :  { %2567 = vpow2.f32 %v2528_v22  ;;  %vm1123_vm4 = vcmp.eq.f32.partialorder %v2970_v24, %v2958_v15  ;;  %1505 = vmatpush1.msra.mxu1 %v1220_v21  ;;  %1497 = vmatprep.mubr.f32.mxu1 %v3321_v0  ;;  %v1332_v22 = vld [vmem:[#allocation10 + $0x570] sm:$0xff]  ;;  %v1273_v24 = vld [vmem:[#allocation10 + $0x398] sm:$0xff] }
 0x13b   :  { %1506 = vmatprep.subr.mxu1 %v1217_v23  ;;  %v2981_v30 = vpop.f32.mrf.mxu0  ;;  %2481 = vmatprep.mubr.msk.f32.mxu0 %vm1123_vm4, %v3323_v26  ;;  %v2987_v46 = vpop.f32.mrf.mxu1  ;;  %v1196_v23 = vld [vmem:[#allocation10 + $0x130] sm:$0xff] }
 0x13c   :  { %1507 = vmatpush1.msra.mxu1 %v1216_v27  ;;  %2482 = vmatmul.mubr.msk.f32.vlgmr.msra.gmra.mxu0 %vm1122_vm3, %v3323_v26  ;;  %vm1125_vm5 = vcmp.eq.f32.partialorder %v2981_v30, %v2956_v14  ;;  %vm1127_vm7 = vcmp.eq.f32.partialorder %v2987_v46, %v2952_v8  ;;  %v1659_v46 = vld [vmem:[#allocation10 + $0x600] sm:$0xff]  ;;  %v1768_v30 = vld [vmem:[#allocation10 + $0x968] sm:$0xff] }
 0x13d   :  { %1508 = vmatprep.subr.mxu1 %v1213_v28  ;;  %1582 = vmatpush1.msra.mxu0 %v1348_v29  ;;  %v2993_v51 = vpop.f32.mrf.mxu0  ;;  %v2995_v55 = vpop.f32.mrf.mxu1  ;;  %v1329_v28 = vld [vmem:[#allocation10 + $0x558] sm:$0xff] }
 0x13e   :  { %vm1126_vm6 = vcmp.eq.f32.partialorder %v2993_v51, %v2958_v15  ;;  %1509 = vmatpush1.msra.mxu1 %v1212_v31  ;;  %1583 = vmatprep.subr.mxu0 %v1345_v40  ;;  %v1193_v29 = vld [vmem:[#allocation10 + $0x118] sm:$0xff]  ;;  %v1836_v51 = vld [vmem:[#allocation10 + $0xb88] sm:$0xff] }
 0x13f   :  { %1510 = vmatprep.subr.mxu1 %v1209_v49  ;;  %1584 = vmatpush1.msra.mxu0 %v1344_v50  ;;  %v3003_v58 = vpop.f32.mrf.mxu1  ;;  %v3005_v59 = vpop.f32.mrf.mxu0  ;;  %v1328_v50 = vld [vmem:[#allocation10 + $0x550] sm:$0xff] }
 0x140   :  { %2483 = vmatprep.mubr.msk.f32.mxu0 %vm1126_vm6, %v3323_v26  ;;  %1511 = vmatpush1.msra.mxu1 %v1208_v54  ;;  %v1192_v54 = vld [vmem:[#allocation10 + $0x110] sm:$0xff]  ;;  %vm1140_vm14 = vcmp.eq.f32.partialorder %v3003_v58, %v2956_v14 }
 0x141   :  { %v2562_v63 = vpop.eup %2561  ;;  %1585 = vmatprep.subr.mxu0 %v1341_v56  ;;  %2484 = vmatmul.mubr.msk.f32.gmra.mxu0 %vm1125_vm5, %v3323_v26  ;;  %v3015_v3 = vpop.f32.mrf.mxu1 }
 0x142   :  { %v3017_v5 = vpop.f32.mrf.mxu0  ;;  %v2344_v6 = vadd.f32 1.0, %v2562_v63  ;;  %2486 = vmatmul.mubr.msk.f32.gmra.mxu1 %vm1127_vm7, %v3323_v26  ;;  %1512 = vmatprep.subr.mxu1 %v1205_v57  ;;  %v1325_v57 = vld [vmem:[#allocation10 + $0x538] sm:$0xff]  ;;  %vm1141_vm13 = vcmp.eq.f32.partialorder %v3015_v3, %v2958_v15  ;;  %v1773_v3 = vld [vmem:[#allocation10 + $0x990] sm:$0xff] }
 0x143   :  { %v2564_v11 = vpop.eup %2563  ;;  %1586 = vmatpush1.msra.mxu0 %v1340_v60  ;;  %1513 = vmatpush1.msra.mxu1 %v1204_v62  ;;  %v3023_v16 = vpop.f32.mrf.mxu1  ;;  %v1189_v60 = vld [vmem:[#allocation10 + $0xf8] sm:$0xff] }
 0x144   :  { %v3025_v18 = vpop.f32.mrf.mxu0  ;;  %2569 = vrcp.f32 %v2344_v6  ;;  %v2345_v21 = vadd.f32 1.0, %v2564_v11  ;;  %1587 = vmatprep.subr.mxu0 %v1337_v1  ;;  %1514 = vmatprep.subr.mxu1 %v1201_v2  ;;  %v1324_v2 = vld [vmem:[#allocation10 + $0x530] sm:$0xff]  ;;  %vm1143_vm1 = vcmp.eq.f32.partialorder %v3023_v16, %v2956_v14 }
 0x145   :  { %v2566_v27 = vpop.eup %2565  ;;  %1588 = vmatpush1.msra.mxu0 %v1336_v7  ;;  %1515 = vmatpush1.msra.mxu1 %v1200_v9  ;;  %v3027_v31 = vpop.f32.mrf.mxu1  ;;  %v1188_v6 = vld [vmem:[#allocation10 + $0xf0] sm:$0xff]  ;;  %v1321_v7 = vld [vmem:[#allocation10 + $0x518] sm:$0xff]  ;;  %vm1142_vm12 = vcmp.eq.f32.partialorder %v3025_v18, %v2952_v8 }
 0x146   :  { %v3029_v40 = vpop.f32.mrf.mxu0  ;;  %2571 = vrcp.f32 %v2345_v21  ;;  %v2346_v49 = vadd.f32 1.0, %v2566_v27  ;;  %1589 = vmatprep.subr.mxu0 %v1333_v12  ;;  %1516 = vmatprep.subr.mxu1 %v1197_v13  ;;  %v1185_v9 = vld [vmem:[#allocation10 + $0xd8] sm:$0xff]  ;;  %v1320_v21 = vld [vmem:[#allocation10 + $0x510] sm:$0xff]  ;;  %vm1144_vm15 = vcmp.eq.f32.partialorder %v3027_v31, %v2958_v15 }
 0x147   :  { %v2568_v56 = vpop.eup %2567  ;;  %1590 = vmatpush1.msra.mxu0 %v1332_v22  ;;  %1517 = vmatpush1.msra.mxu1 %v1196_v23  ;;  %v3031_v62 = vpop.f32.mrf.mxu1  ;;  %vm2199_vm8 = vcmp.eq.f32.partialorder %v3029_v40, 1.0  ;;  %v1184_v23 = vld [vmem:[#allocation10 + $0xd0] sm:$0xff]  ;;  %v1762_v18 = vld [vmem:[#allocation10 + $0x938] sm:$0xff] }
 0x148   :  { %v3034_v63 = vpop.f32.mrf.mxu0  ;;  %2573 = vrcp.f32 %v2346_v49  ;;  %v2347_v1 = vadd.f32 1.0, %v2568_v56  ;;  %1591 = vmatprep.subr.mxu0 %v1329_v28  ;;  %1518 = vmatprep.subr.mxu1 %v1193_v29  ;;  %vm2202_vm9 = vcmp.eq.f32.partialorder %v3031_v62, 1.0  ;;  %v2513_v11 = vsel %vm2199_vm8, 1.0, %v3321_v0  ;;  %v1317_v29 = vld [vmem:[#allocation10 + $0x4f8] sm:$0xff] }
 0x149   :  { %1592 = vmatpush1.msra.mxu0 %v1328_v50  ;;  %1519 = vmatpush1.msra.mxu1 %v1192_v54  ;;  %v3038_v12 = vpop.f32.mrf.mxu1  ;;  %v2516_v22 = vsel %vm2202_vm9, 1.0, %v3321_v0  ;;  %v2313_v27 = vmul.f32 %v2513_v11, %v2948_v61  ;;  %v1181_v49 = vld [vmem:[#allocation10 + $0xb8] sm:$0xff]  ;;  %v1316_v50 = vld [vmem:[#allocation10 + $0x4f0] sm:$0xff]  ;;  %vm1145_vm0 = vcmp.eq.f32.partialorder %v3034_v63, %v2952_v8  ;;  %vm2160_vm9 = vcmp.ge.f32.partialorder %v3017_v5, 2.0 }
 0x14a   :  { %v3040_v13 = vpop.f32.mrf.mxu0  ;;  %2575 = vrcp.f32 %v2347_v1  ;;  %1593 = vmatprep.subr.mxu0 %v1325_v57  ;;  %1520 = vmatprep.subr.mxu1 %v1189_v60  ;;  %v3045_v28 = vmul.f32 %v2516_v22, %v2960_v17  ;;  %vm2200_vm10 = vcmp.eq.f32.partialorder %v3038_v12, 1.0  ;;  %v1180_v54 = vld [vmem:[#allocation10 + $0xb0] sm:$0xff]  ;;  %v1313_v56 = vld [vmem:[#allocation10 + $0x4d8] sm:$0xff] }
 0x14b   :  { %1594 = vmatpush1.msra.mxu0 %v1324_v2  ;;  %1521 = vmatpush1.msra.mxu1 %v1188_v6  ;;  %vm2201_vm11 = vcmp.eq.f32.partialorder %v3040_v13, 1.0  ;;  %v1177_v57 = vld [vmem:[#allocation10 + $0x98] sm:$0xff]  ;;  %v1312_v61 = vld [vmem:[#allocation10 + $0x4d0] sm:$0xff]  ;;  %v2514_v17 = vsel %vm2200_vm10, 1.0, %v3321_v0  ;;  %vm2164_vm10 = vcmp.le.f32.partialorder %v3017_v5, 40.0 }
 0x14c   :  { %1595 = vmatprep.subr.mxu0 %v1321_v7  ;;  %1522 = vmatprep.subr.mxu1 %v1185_v9  ;;  %v1176_v60 = vld [vmem:[#allocation10 + $0x90] sm:$0xff]  ;;  %v1309_v1 = vld [vmem:[#allocation10 + $0x4b8] sm:$0xff]  ;;  %v2515_v6 = vsel %vm2201_vm11, 1.0, %v3321_v0 }
 0x14d   :  { %1596 = vmatpush1.msra.mxu0 %v1320_v21  ;;  %1523 = vmatpush1.msra.mxu1 %v1184_v23  ;;  %v1173_v2 = vld [vmem:[#allocation10 + $0x78] sm:$0xff]  ;;  %v1308_v7 = vld [vmem:[#allocation10 + $0x4b0] sm:$0xff] }
 0x14e   :  { %1597 = vmatprep.subr.mxu0 %v1317_v29  ;;  %1524 = vmatprep.subr.mxu1 %v1181_v49  ;;  %v1172_v9 = vld [vmem:[#allocation10 + $0x70] sm:$0xff]  ;;  %v1305_v21 = vld [vmem:[#allocation10 + $0x498] sm:$0xff]  ;;  %v2314_v29 = vmul.f32 %v2514_v17, %v2950_v4  ;;  %v2315_v49 = vmul.f32 %v2515_v6, %v2954_v10 }
 0x14f   :  { %1598 = vmatpush1.msra.mxu0 %v1316_v50  ;;  %1525 = vmatpush1.msra.mxu1 %v1180_v54  ;;  %v1169_v22 = vld [vmem:[#allocation10 + $0x58] sm:$0xff]  ;;  %v1304_v50 = vld [vmem:[#allocation10 + $0x490] sm:$0xff] }
 0x150   :  { %1599 = vmatprep.subr.mxu0 %v1313_v56  ;;  %1526 = vmatprep.subr.mxu1 %v1177_v57  ;;  %v1168_v54 = vld [vmem:[#allocation10 + $0x50] sm:$0xff]  ;;  %v1301_v56 = vld [vmem:[#allocation10 + $0x478] sm:$0xff] }
 0x151   :  { %v2570_v11 = vpop.eup %2569  ;;  %1600 = vmatpush1.msra.mxu0 %v1312_v61  ;;  %1527 = vmatpush1.msra.mxu1 %v1176_v60  ;;  %v1165_v57 = vld [vmem:[#allocation10 + $0x38] sm:$0xff]  ;;  %v1300_v61 = vld [vmem:[#allocation10 + $0x470] sm:$0xff] }
 0x152   :  { %v3051_v23 = vmul.f32 %v2570_v11, %v2313_v27  ;;  %1601 = vmatprep.subr.mxu0 %v1309_v1  ;;  %1528 = vmatprep.subr.mxu1 %v1173_v2  ;;  %v1164_v27 = vld [vmem:[#allocation10 + $0x30] sm:$0xff]  ;;  %v1297_v4 = vld [vmem:[#allocation10 + $0x458] sm:$0xff] }
 0x153   :  { %v2572_v0 = vpop.eup %2571  ;;  %1602 = vmatpush1.msra.mxu0 %v1308_v7  ;;  %1529 = vmatpush1.msra.mxu1 %v1172_v9  ;;  %v1161_v17 = vld [vmem:[#allocation10 + $0x18] sm:$0xff]  ;;  %v1296_v10 = vld [vmem:[#allocation10 + $0x450] sm:$0xff] }
 0x154   :  { %v3055_v26 = vmul.f32 %v2572_v0, %v2314_v29  ;;  %1603 = vmatprep.subr.mxu0 %v1305_v21  ;;  %1530 = vmatprep.subr.mxu1 %v1169_v22  ;;  %v1160_v2 = vld [vmem:[#allocation10 + $0x10] sm:$0xff]  ;;  %v1293_v0 = vld [vmem:[#allocation10 + $0x438] sm:$0xff]  ;;  %v3325_v29 = vmov 1.0  }
 0x155   :  { %v2574_v60 = vpop.eup %2573  ;;  %1604 = vmatpush1.msra.mxu0 %v1304_v50  ;;  %1531 = vmatpush1.msra.mxu1 %v1168_v54  ;;  %v1285_v9 = vld [vmem:[#allocation10 + $0x3f8] sm:$0xff]  ;;  %v1292_v11 = vld [vmem:[#allocation10 + $0x430] sm:$0xff]  ;;  %v1720_v54 = vld [vmem:[#allocation10 + $0x7e8] sm:$0xff] }
 0x156   :  { %v3057_v1 = vmul.f32 %v2574_v60, %v2315_v49  ;;  %1605 = vmatprep.subr.mxu0 %v1301_v56  ;;  %1532 = vmatprep.subr.mxu1 %v1165_v57  ;;  %v1284_v21 = vld [vmem:[#allocation10 + $0x3f0] sm:$0xff]  ;;  %v1289_v22 = vld [vmem:[#allocation10 + $0x418] sm:$0xff]  ;;  %v1719_v57 = vld [vmem:[#allocation10 + $0x7e0] sm:$0xff] }
 0x157   :  { %v2576_v6 = vpop.eup %2575  ;;  %1606 = vmatpush1.msra.mxu0 %v1300_v61  ;;  %1533 = vmatpush1.msra.mxu1 %v1164_v27  ;;  %v1281_v49 = vld [vmem:[#allocation10 + $0x3d8] sm:$0xff]  ;;  %v1288_v50 = vld [vmem:[#allocation10 + $0x410] sm:$0xff]  ;;  %v3326_v61 = vmov 0.0   ;;  %v1716_v60 = vld [vmem:[#allocation10 + $0x7c8] sm:$0xff] }
 0x158   :  { %v3060_v7 = vmul.f32 %v2576_v6, %v3045_v28  ;;  %1607 = vmatprep.subr.mxu0 %v1297_v4  ;;  %1534 = vmatprep.subr.mxu1 %v1161_v17  ;;  %v1280_v28 = vld [vmem:[#allocation10 + $0x3d0] sm:$0xff]  ;;  %v1277_v56 = vld [vmem:[#allocation10 + $0x3b8] sm:$0xff]  ;;  %v1715_v4 = vld [vmem:[#allocation10 + $0x7c0] sm:$0xff] }
 0x159   :  { %1608 = vmatpush1.msra.mxu0 %v1296_v10  ;;  %1535 = vmatpush1.msra.mxu1 %v1160_v2  ;;  %v1276_v27 = vld [vmem:[#allocation10 + $0x3b0] sm:$0xff]  ;;  %v1712_v10 = vld [vmem:[#allocation10 + $0x7a8] sm:$0xff]  ;;  %v1269_v2 = vld [vmem:[#allocation10 + $0x378] sm:$0xff] }
 0x15a   :  { %2487 = vmatprep.mubr.msk.f32.mxu1 %vm1123_vm4, %v3325_v29  ;;  %1609 = vmatprep.subr.mxu0 %v1293_v0  ;;  %v1272_v17 = vld [vmem:[#allocation10 + $0x390] sm:$0xff]  ;;  %v1711_v6 = vld [vmem:[#allocation10 + $0x7a0] sm:$0xff]  ;;  %v1742_v63 = vld [vmem:[#allocation10 + $0x898] sm:$0xff]  ;;  %vm2161_vm4 = vcmp.ge.f32.partialorder %v2995_v55, 2.0 }
 0x15b   :  { %1536 = vmatprep.subr.mxu1 %v1285_v9  ;;  %1610 = vmatpush1.msra.mxu0 %v1292_v11  ;;  %v1268_v0 = vld [vmem:[#allocation10 + $0x370] sm:$0xff]  ;;  %v1708_v9 = vld [vmem:[#allocation10 + $0x788] sm:$0xff]  ;;  %v1265_v11 = vld [vmem:[#allocation10 + $0x358] sm:$0xff] }
 0x15c   :  { %1537 = vmatpush2.msra.mxu1 %v1284_v21  ;;  %1611 = vmatprep.subr.mxu0 %v1289_v22  ;;  %v1264_v21 = vld [vmem:[#allocation10 + $0x350] sm:$0xff]  ;;  %v1704_v22 = vld [vmem:[#allocation10 + $0x768] sm:$0xff] }
 0x15d   :  { %1538 = vmatprep.subr.mxu1 %v1281_v49  ;;  %1612 = vmatpush1.msra.mxu0 %v1288_v50  ;;  %v1261_v49 = vld [vmem:[#allocation10 + $0x338] sm:$0xff]  ;;  %v1703_v50 = vld [vmem:[#allocation10 + $0x760] sm:$0xff]  ;;  %v1745_v8 = vld [vmem:[#allocation10 + $0x8b0] sm:$0xff] }
 0x15e   :  { %1645 = vmatprep.mubr.f32.mxu0 %v3326_v61  ;;  %1539 = vmatpush2.msra.mxu1 %v1280_v28  ;;  %v1260_v28 = vld [vmem:[#allocation10 + $0x330] sm:$0xff] }
 0x15f   :  { %2491 = vmatmul.mubr.msk.f32.vlgmr.msra.gmra.mxu0 %vm1124_vm2, %v3325_v29  ;;  %1851 = vmatprep.subr.mxu0 %v1720_v54  ;;  %v1700_v54 = vld [vmem:[#allocation10 + $0x748] sm:$0xff]  ;;  %vm2159_vm2 = vcmp.ge.f32.partialorder %v2972_v25, 2.0 }
 0x160   :  { %1540 = vmatprep.subr.mxu1 %v1277_v56  ;;  %1852 = vmatpush1.msra.mxu0 %v1719_v57  ;;  %v1257_v56 = vld [vmem:[#allocation10 + $0x318] sm:$0xff]  ;;  %v1699_v57 = vld [vmem:[#allocation10 + $0x740] sm:$0xff] }
 0x161   :  { %1541 = vmatpush2.msra.mxu1 %v1276_v27  ;;  %1853 = vmatprep.subr.mxu0 %v1716_v60  ;;  %v1256_v27 = vld [vmem:[#allocation10 + $0x310] sm:$0xff]  ;;  %v1696_v60 = vld [vmem:[#allocation10 + $0x728] sm:$0xff] }
 0x162   :  { %1542 = vmatprep.subr.mxu1 %v1273_v24  ;;  %1854 = vmatpush1.msra.mxu0 %v1715_v4  ;;  %v1253_v24 = vld [vmem:[#allocation10 + $0x2f8] sm:$0xff]  ;;  %v1695_v4 = vld [vmem:[#allocation10 + $0x720] sm:$0xff] }
 0x163   :  { %1543 = vmatpush2.msra.mxu1 %v1272_v17  ;;  %1855 = vmatprep.subr.mxu0 %v1712_v10  ;;  %v1252_v17 = vld [vmem:[#allocation10 + $0x2f0] sm:$0xff]  ;;  %v1692_v10 = vld [vmem:[#allocation10 + $0x708] sm:$0xff] }
 0x164   :  { %1544 = vmatprep.subr.mxu1 %v1269_v2  ;;  %1856 = vmatpush1.msra.mxu0 %v1711_v6  ;;  %v1249_v2 = vld [vmem:[#allocation10 + $0x2d8] sm:$0xff]  ;;  %v1691_v6 = vld [vmem:[#allocation10 + $0x700] sm:$0xff] }
 0x165   :  { %1545 = vmatpush2.msra.mxu1 %v1268_v0  ;;  %1857 = vmatprep.subr.mxu0 %v1708_v9  ;;  %v1248_v0 = vld [vmem:[#allocation10 + $0x2d0] sm:$0xff]  ;;  %v1688_v9 = vld [vmem:[#allocation10 + $0x6e8] sm:$0xff] }
 0x166   :  { %1546 = vmatprep.subr.mxu1 %v1265_v11  ;;  %1858 = vmatpush1.msra.mxu0 %v1707_v20  ;;  %v1245_v11 = vld [vmem:[#allocation10 + $0x2b8] sm:$0xff]  ;;  %v1687_v20 = vld [vmem:[#allocation10 + $0x6e0] sm:$0xff] }
 0x167   :  { %1547 = vmatpush2.msra.mxu1 %v1264_v21  ;;  %1859 = vmatprep.subr.mxu0 %v1704_v22  ;;  %v1244_v21 = vld [vmem:[#allocation10 + $0x2b0] sm:$0xff]  ;;  %v1684_v22 = vld [vmem:[#allocation10 + $0x6c8] sm:$0xff] }
 0x168   :  { %1548 = vmatprep.subr.mxu1 %v1261_v49  ;;  %1860 = vmatpush1.msra.mxu0 %v1703_v50  ;;  %v1241_v49 = vld [vmem:[#allocation10 + $0x298] sm:$0xff]  ;;  %v1683_v50 = vld [vmem:[#allocation10 + $0x6c0] sm:$0xff] }
 0x169   :  { %1549 = vmatpush2.msra.mxu1 %v1260_v28  ;;  %1861 = vmatprep.subr.mxu0 %v1700_v54  ;;  %v1240_v28 = vld [vmem:[#allocation10 + $0x290] sm:$0xff]  ;;  %v1680_v54 = vld [vmem:[#allocation10 + $0x6a8] sm:$0xff] }
 0x16a   :  { %1550 = vmatprep.subr.mxu1 %v1257_v56  ;;  %1862 = vmatpush1.msra.mxu0 %v1699_v57  ;;  %v1237_v56 = vld [vmem:[#allocation10 + $0x278] sm:$0xff]  ;;  %v1679_v57 = vld [vmem:[#allocation10 + $0x6a0] sm:$0xff] }
 0x16b   :  { %1551 = vmatpush2.msra.mxu1 %v1256_v27  ;;  %1863 = vmatprep.subr.mxu0 %v1696_v60  ;;  %v1236_v27 = vld [vmem:[#allocation10 + $0x270] sm:$0xff]  ;;  %v1676_v60 = vld [vmem:[#allocation10 + $0x688] sm:$0xff] }
 0x16c   :  { %1552 = vmatprep.subr.mxu1 %v1253_v24  ;;  %1864 = vmatpush1.msra.mxu0 %v1695_v4  ;;  %v1233_v24 = vld [vmem:[#allocation10 + $0x258] sm:$0xff]  ;;  %v1675_v4 = vld [vmem:[#allocation10 + $0x680] sm:$0xff] }
 0x16d   :  { %1553 = vmatpush2.msra.mxu1 %v1252_v17  ;;  %1865 = vmatprep.subr.mxu0 %v1692_v10  ;;  %v1232_v17 = vld [vmem:[#allocation10 + $0x250] sm:$0xff]  ;;  %v1672_v10 = vld [vmem:[#allocation10 + $0x668] sm:$0xff] }
 0x16e   :  { %1554 = vmatprep.subr.mxu1 %v1249_v2  ;;  %1866 = vmatpush1.msra.mxu0 %v1691_v6  ;;  %v1229_v2 = vld [vmem:[#allocation10 + $0x238] sm:$0xff]  ;;  %v1228_v6 = vld [vmem:[#allocation10 + $0x230] sm:$0xff] }
 0x16f   :  { %1555 = vmatpush2.msra.mxu1 %v1248_v0  ;;  %1867 = vmatprep.subr.mxu0 %v1688_v9  ;;  %v1671_v0 = vld [vmem:[#allocation10 + $0x660] sm:$0xff]  ;;  %v1225_v9 = vld [vmem:[#allocation10 + $0x218] sm:$0xff] }
 0x170   :  { %1556 = vmatprep.subr.mxu1 %v1245_v11  ;;  %1868 = vmatpush1.msra.mxu0 %v1687_v20  ;;  %v1668_v11 = vld [vmem:[#allocation10 + $0x648] sm:$0xff]  ;;  %v1224_v20 = vld [vmem:[#allocation10 + $0x210] sm:$0xff] }
 0x171   :  { %1557 = vmatpush2.msra.mxu1 %v1244_v21  ;;  %1869 = vmatprep.subr.mxu0 %v1684_v22  ;;  %v1667_v21 = vld [vmem:[#allocation10 + $0x640] sm:$0xff]  ;;  %v1664_v22 = vld [vmem:[#allocation10 + $0x628] sm:$0xff] }
 0x172   :  { %1558 = vmatprep.subr.mxu1 %v1241_v49  ;;  %1870 = vmatpush1.msra.mxu0 %v1683_v50  ;;  %v1848_v49 = vld [vmem:[#allocation10 + $0xbe8] sm:$0xff]  ;;  %v1663_v50 = vld [vmem:[#allocation10 + $0x620] sm:$0xff] }
 0x173   :  { %1559 = vmatpush2.msra.mxu1 %v1240_v28  ;;  %1871 = vmatprep.subr.mxu0 %v1680_v54  ;;  %v1660_v28 = vld [vmem:[#allocation10 + $0x608] sm:$0xff]  ;;  %v1847_v54 = vld [vmem:[#allocation10 + $0xbe0] sm:$0xff] }
 0x174   :  { %1560 = vmatprep.subr.mxu1 %v1237_v56  ;;  %1872 = vmatpush1.msra.mxu0 %v1679_v57  ;;  %v1844_v56 = vld [vmem:[#allocation10 + $0xbc8] sm:$0xff] }
 0x175   :  { %1561 = vmatpush2.msra.mxu1 %v1236_v27  ;;  %1873 = vmatprep.subr.mxu0 %v1676_v60  ;;  %v1784_v57 = vld [vmem:[#allocation10 + $0x9e8] sm:$0xff]  ;;  %v1843_v27 = vld [vmem:[#allocation10 + $0xbc0] sm:$0xff] }
 0x176   :  { %1562 = vmatprep.subr.mxu1 %v1233_v24  ;;  %1874 = vmatpush1.msra.mxu0 %v1675_v4  ;;  %v1783_v60 = vld [vmem:[#allocation10 + $0x9e0] sm:$0xff]  ;;  %v1780_v24 = vld [vmem:[#allocation10 + $0x9c8] sm:$0xff] }
 0x177   :  { %1563 = vmatpush2.msra.mxu1 %v1232_v17  ;;  %1651 = vmatprep.mubr.f32.mxu0 %v3326_v61  ;;  %v1839_v4 = vld [vmem:[#allocation10 + $0xba0] sm:$0xff] }
 0x178   :  { %1875 = vmatprep.subr.mxu0 %v1672_v10  ;;  %1564 = vmatprep.subr.mxu1 %v1229_v2  ;;  %v1779_v17 = vld [vmem:[#allocation10 + $0x9c0] sm:$0xff]  ;;  %v1776_v10 = vld [vmem:[#allocation10 + $0x9a8] sm:$0xff] }
 0x179   :  { %2492 = vmatmul.mubr.msk.f32.gmra.mxu0 %vm1127_vm7, %v3325_v29  ;;  %1565 = vmatpush2.msra.mxu1 %v1228_v6  ;;  %v1835_v2 = vld [vmem:[#allocation10 + $0xb80] sm:$0xff]  ;;  %vm2183_vm7 = vcmp.le.f32.partialorder %v3029_v40, 40.0 }
 0x17a   :  { %1876 = vmatpush1.msra.mxu0 %v1671_v0  ;;  %1566 = vmatprep.subr.mxu1 %v1225_v9  ;;  %v1775_v6 = vld [vmem:[#allocation10 + $0x9a0] sm:$0xff]  ;;  %v1832_v0 = vld [vmem:[#allocation10 + $0xb68] sm:$0xff] }
 0x17b   :  { %1877 = vmatprep.subr.mxu0 %v1668_v11  ;;  %1567 = vmatpush2.msra.mxu1 %v1224_v20  ;;  %v1772_v9 = vld [vmem:[#allocation10 + $0x988] sm:$0xff]  ;;  %v1831_v11 = vld [vmem:[#allocation10 + $0xb60] sm:$0xff] }
 0x17c   :  { %1878 = vmatpush1.msra.mxu0 %v1667_v21  ;;  %2488 = vmatmul.mubr.msk.f32.vlgmr.msra.gmra.mxu1 %vm1122_vm3, %v3325_v29  ;;  %v1771_v20 = vld [vmem:[#allocation10 + $0x980] sm:$0xff]  ;;  %v1828_v21 = vld [vmem:[#allocation10 + $0xb48] sm:$0xff]  ;;  %vm2163_vm3 = vcmp.le.f32.partialorder %v2972_v25, 40.0 }
 0x17d   :  { %1879 = vmatprep.subr.mxu0 %v1664_v22  ;;  %1928 = vmatprep.subr.mxu1 %v1848_v49  ;;  %v1827_v22 = vld [vmem:[#allocation10 + $0xb40] sm:$0xff]  ;;  %vm3206_vm8 = vmand %vm2159_vm2, %vm2163_vm3  ;;  %vm2181_vm2 = vcmp.ge.f32.partialorder %v3040_v13, 2.0  ;;  %vm2185_vm3 = vcmp.le.f32.partialorder %v3040_v13, 40.0 }
 0x17e   :  { %1880 = vmatpush1.msra.mxu0 %v1663_v50  ;;  %2489 = vmatprep.mubr.msk.f32.mxu1 %vm1126_vm6, %v3325_v29  ;;  %v1767_v49 = vld [vmem:[#allocation10 + $0x960] sm:$0xff]  ;;  %v1824_v50 = vld [vmem:[#allocation10 + $0xb28] sm:$0xff]  ;;  %vm2179_vm6 = vcmp.ge.f32.partialorder %v3029_v40, 2.0 }
 0x17f   :  { %1881 = vmatprep.subr.mxu0 %v1660_v28  ;;  %1929 = vmatpush1.msra.mxu1 %v1847_v54  ;;  %v1764_v28 = vld [vmem:[#allocation10 + $0x948] sm:$0xff]  ;;  %v1823_v54 = vld [vmem:[#allocation10 + $0xb20] sm:$0xff] }
 0x180   :  { %1882 = vmatpush1.msra.mxu0 %v1659_v46  ;;  %1930 = vmatprep.subr.mxu1 %v1844_v56  ;;  %v1763_v46 = vld [vmem:[#allocation10 + $0x940] sm:$0xff]  ;;  %v1820_v56 = vld [vmem:[#allocation10 + $0xb08] sm:$0xff] }
 0x181   :  { %1883 = vmatprep.subr.mxu0 %v1784_v57  ;;  %1931 = vmatpush1.msra.mxu1 %v1843_v27  ;;  %v1760_v57 = vld [vmem:[#allocation10 + $0x928] sm:$0xff]  ;;  %v1819_v27 = vld [vmem:[#allocation10 + $0xb00] sm:$0xff] }
 0x182   :  { %2490 = vmatmul.mubr.msk.f32.gmra.mxu1 %vm1125_vm5, %v3325_v29  ;;  %1884 = vmatpush2.msra.mxu0 %v1783_v60  ;;  %v1759_v60 = vld [vmem:[#allocation10 + $0x920] sm:$0xff]  ;;  %vm2165_vm5 = vcmp.le.f32.partialorder %v2995_v55, 40.0 }
 0x183   :  { %1932 = vmatprep.subr.mxu1 %v1840_v19  ;;  %1885 = vmatprep.subr.mxu0 %v1780_v24  ;;  %v1816_v19 = vld [vmem:[#allocation10 + $0xae8] sm:$0xff]  ;;  %vm3216_vm11 = vmand %vm2161_vm4, %vm2165_vm5 }
 0x184   :  { %1933 = vmatpush1.msra.mxu1 %v1839_v4  ;;  %1886 = vmatpush2.msra.mxu0 %v1779_v17  ;;  %v1756_v24 = vld [vmem:[#allocation10 + $0x908] sm:$0xff]  ;;  %v1815_v4 = vld [vmem:[#allocation10 + $0xae0] sm:$0xff] }
 0x185   :  { %1934 = vmatprep.subr.mxu1 %v1836_v51  ;;  %1887 = vmatprep.subr.mxu0 %v1776_v10  ;;  %v1755_v17 = vld [vmem:[#allocation10 + $0x900] sm:$0xff]  ;;  %v1812_v51 = vld [vmem:[#allocation10 + $0xac8] sm:$0xff] }
 0x186   :  { %1935 = vmatpush1.msra.mxu1 %v1835_v2  ;;  %1888 = vmatpush2.msra.mxu0 %v1775_v6  ;;  %v1752_v10 = vld [vmem:[#allocation10 + $0x8e8] sm:$0xff]  ;;  %v1811_v2 = vld [vmem:[#allocation10 + $0xac0] sm:$0xff] }
 0x187   :  { %1936 = vmatprep.subr.mxu1 %v1832_v0  ;;  %1889 = vmatprep.subr.mxu0 %v1772_v9  ;;  %v1751_v6 = vld [vmem:[#allocation10 + $0x8e0] sm:$0xff]  ;;  %v1808_v0 = vld [vmem:[#allocation10 + $0xaa8] sm:$0xff] }
 0x188   :  { %1937 = vmatpush1.msra.mxu1 %v1831_v11  ;;  %1890 = vmatpush2.msra.mxu0 %v1771_v20  ;;  %v1748_v9 = vld [vmem:[#allocation10 + $0x8c8] sm:$0xff]  ;;  %v1807_v11 = vld [vmem:[#allocation10 + $0xaa0] sm:$0xff] }
 0x189   :  { %1938 = vmatprep.subr.mxu1 %v1828_v21  ;;  %1891 = vmatprep.subr.mxu0 %v1768_v30  ;;  %v1747_v20 = vld [vmem:[#allocation10 + $0x8c0] sm:$0xff]  ;;  %v1804_v21 = vld [vmem:[#allocation10 + $0xa88] sm:$0xff] }
 0x18a   :  { %1939 = vmatpush1.msra.mxu1 %v1827_v22  ;;  %1892 = vmatpush2.msra.mxu0 %v1767_v49  ;;  %v1744_v30 = vld [vmem:[#allocation10 + $0x8a8] sm:$0xff]  ;;  %v1803_v22 = vld [vmem:[#allocation10 + $0xa80] sm:$0xff] }
 0x18b   :  { %1940 = vmatprep.subr.mxu1 %v1824_v50  ;;  %1893 = vmatprep.subr.mxu0 %v1764_v28  ;;  %v1743_v49 = vld [vmem:[#allocation10 + $0x8a0] sm:$0xff]  ;;  %v1800_v50 = vld [vmem:[#allocation10 + $0xa68] sm:$0xff] }
 0x18c   :  { %1941 = vmatpush1.msra.mxu1 %v1823_v54  ;;  %1894 = vmatpush2.msra.mxu0 %v1763_v46  ;;  %v1740_v28 = vld [vmem:[#allocation10 + $0x888] sm:$0xff]  ;;  %v1799_v54 = vld [vmem:[#allocation10 + $0xa60] sm:$0xff] }
 0x18d   :  { %1942 = vmatprep.subr.mxu1 %v1820_v56  ;;  %1895 = vmatprep.subr.mxu0 %v1760_v57  ;;  %v1739_v46 = vld [vmem:[#allocation10 + $0x880] sm:$0xff]  ;;  %v1796_v56 = vld [vmem:[#allocation10 + $0xa48] sm:$0xff] }
 0x18e   :  { %1943 = vmatpush1.msra.mxu1 %v1819_v27  ;;  %1896 = vmatpush2.msra.mxu0 %v1759_v60  ;;  %v1736_v57 = vld [vmem:[#allocation10 + $0x868] sm:$0xff]  ;;  %v1795_v27 = vld [vmem:[#allocation10 + $0xa40] sm:$0xff] }
 0x18f   :  { %1944 = vmatprep.subr.mxu1 %v1816_v19  ;;  %1897 = vmatprep.subr.mxu0 %v1756_v24  ;;  %v1735_v60 = vld [vmem:[#allocation10 + $0x860] sm:$0xff]  ;;  %v1792_v19 = vld [vmem:[#allocation10 + $0xa28] sm:$0xff] }
 0x190   :  { %1945 = vmatpush1.msra.mxu1 %v1815_v4  ;;  %1898 = vmatpush2.msra.mxu0 %v1755_v17  ;;  %v1732_v24 = vld [vmem:[#allocation10 + $0x848] sm:$0xff]  ;;  %v1791_v4 = vld [vmem:[#allocation10 + $0xa20] sm:$0xff] }
 0x191   :  { %1946 = vmatprep.subr.mxu1 %v1812_v51  ;;  %1899 = vmatprep.subr.mxu0 %v1752_v10  ;;  %v1731_v17 = vld [vmem:[#allocation10 + $0x840] sm:$0xff]  ;;  %v1788_v51 = vld [vmem:[#allocation10 + $0xa08] sm:$0xff] }
 0x192   :  { %1947 = vmatpush1.msra.mxu1 %v1811_v2  ;;  %1900 = vmatpush2.msra.mxu0 %v1751_v6  ;;  %v1728_v10 = vld [vmem:[#allocation10 + $0x828] sm:$0xff]  ;;  %v1787_v2 = vld [vmem:[#allocation10 + $0xa00] sm:$0xff] }
 0x193   :  { %1948 = vmatprep.subr.mxu1 %v1808_v0  ;;  %1901 = vmatprep.subr.mxu0 %v1748_v9  ;;  %v1727_v6 = vld [vmem:[#allocation10 + $0x820] sm:$0xff]  ;;  %v1722_v0 = vld [vmem:[#allocation10 + $0x7f8] sm:$0xff]  ;;  %v1724_v9 = vld [vmem:[#allocation10 + $0x808] sm:$0xff] }
 0x194   :  { %1949 = vmatpush1.msra.mxu1 %v1807_v11  ;;  %1902 = vmatpush2.msra.mxu0 %v1747_v20  ;;  %v1721_v11 = vld [vmem:[#allocation10 + $0x7f0] sm:$0xff]  ;;  %v1723_v20 = vld [vmem:[#allocation10 + $0x800] sm:$0xff] }
 0x195   :  { %1950 = vmatprep.subr.mxu1 %v1804_v21  ;;  %1903 = vmatprep.subr.mxu0 %v1744_v30  ;;  %v1718_v21 = vld [vmem:[#allocation10 + $0x7d8] sm:$0xff]  ;;  %v1717_v30 = vld [vmem:[#allocation10 + $0x7d0] sm:$0xff] }
 0x196   :  { %1951 = vmatpush1.msra.mxu1 %v1803_v22  ;;  %1904 = vmatpush2.msra.mxu0 %v1743_v49  ;;  %v1850_v22 = vld [vmem:[#allocation10 + $0xbf8] sm:$0xff] }
 0x197   :  { %1952 = vmatprep.subr.mxu1 %v1800_v50  ;;  %1905 = vmatprep.subr.mxu0 %v1740_v28  ;;  %v1714_v49 = vld [vmem:[#allocation10 + $0x7b8] sm:$0xff]  ;;  %v1849_v50 = vld [vmem:[#allocation10 + $0xbf0] sm:$0xff] }
 0x198   :  { %1953 = vmatpush1.msra.mxu1 %v1799_v54  ;;  %1906 = vmatpush2.msra.mxu0 %v1739_v46  ;;  %v1713_v28 = vld [vmem:[#allocation10 + $0x7b0] sm:$0xff]  ;;  %v1846_v54 = vld [vmem:[#allocation10 + $0xbd8] sm:$0xff] }
 0x199   :  { %1954 = vmatprep.subr.mxu1 %v1796_v56  ;;  %1907 = vmatprep.subr.mxu0 %v1736_v57  ;;  %v1710_v46 = vld [vmem:[#allocation10 + $0x798] sm:$0xff]  ;;  %v1845_v56 = vld [vmem:[#allocation10 + $0xbd0] sm:$0xff] }
 0x19a   :  { %1955 = vmatpush1.msra.mxu1 %v1795_v27  ;;  %1908 = vmatpush2.msra.mxu0 %v1735_v60  ;;  %v1709_v57 = vld [vmem:[#allocation10 + $0x790] sm:$0xff]  ;;  %v1842_v27 = vld [vmem:[#allocation10 + $0xbb8] sm:$0xff] }
 0x19b   :  { %1956 = vmatprep.subr.mxu1 %v1792_v19  ;;  %1909 = vmatprep.subr.mxu0 %v1732_v24  ;;  %v1706_v60 = vld [vmem:[#allocation10 + $0x778] sm:$0xff]  ;;  %v1841_v19 = vld [vmem:[#allocation10 + $0xbb0] sm:$0xff] }
 0x19c   :  { %1957 = vmatpush1.msra.mxu1 %v1791_v4  ;;  %1910 = vmatpush2.msra.mxu0 %v1731_v17  ;;  %v1705_v24 = vld [vmem:[#allocation10 + $0x770] sm:$0xff]  ;;  %v1838_v4 = vld [vmem:[#allocation10 + $0xb98] sm:$0xff] }
 0x19d   :  { %1958 = vmatprep.subr.mxu1 %v1788_v51  ;;  %1911 = vmatprep.subr.mxu0 %v1728_v10  ;;  %v1702_v17 = vld [vmem:[#allocation10 + $0x758] sm:$0xff]  ;;  %v1837_v51 = vld [vmem:[#allocation10 + $0xb90] sm:$0xff] }
 0x19e   :  { %1959 = vmatpush1.msra.mxu1 %v1787_v2  ;;  %1992 = vmatprep.mubr.f32.mxu1 %v3326_v61  ;;  %v1701_v10 = vld [vmem:[#allocation10 + $0x750] sm:$0xff]  ;;  %v1834_v2 = vld [vmem:[#allocation10 + $0xb78] sm:$0xff] }
 0x19f   :  { %1912 = vmatpush2.msra.mxu0 %v1727_v6  ;;  %2497 = vmatmul.mubr.msk.f32.vlgmr.msra.gmra.mxu1 %vm1142_vm12, %v3325_v29  ;;  %v1698_v6 = vld [vmem:[#allocation10 + $0x738] sm:$0xff] }
 0x1a0   :  { %2005 = vmatprep.subr.mxu1 %v1722_v0  ;;  %1913 = vmatprep.subr.mxu0 %v1724_v9  ;;  %v1833_v0 = vld [vmem:[#allocation10 + $0xb70] sm:$0xff] }
 0x1a1   :  { %2006 = vmatpush1.msra.mxu1 %v1721_v11  ;;  %1914 = vmatpush2.msra.mxu0 %v1723_v20  ;;  %v1697_v9 = vld [vmem:[#allocation10 + $0x730] sm:$0xff]  ;;  %v1830_v11 = vld [vmem:[#allocation10 + $0xb58] sm:$0xff] }
 0x1a2   :  { %2493 = vmatprep.mubr.msk.f32.mxu0 %vm1141_vm13, %v3325_v29  ;;  %2007 = vmatprep.subr.mxu1 %v1718_v21  ;;  %v1694_v20 = vld [vmem:[#allocation10 + $0x718] sm:$0xff]  ;;  %v1829_v21 = vld [vmem:[#allocation10 + $0xb50] sm:$0xff] }
 0x1a3   :  { %2494 = vmatmul.mubr.msk.f32.vlgmr.msra.gmra.mxu0 %vm1140_vm14, %v3325_v29  ;;  %2008 = vmatpush1.msra.mxu1 %v1717_v30  ;;  %v1693_v30 = vld [vmem:[#allocation10 + $0x710] sm:$0xff] }
 0x1a4   :  { %2082 = vmatprep.subr.mxu0 %v1850_v22  ;;  %2009 = vmatprep.subr.mxu1 %v1714_v49  ;;  %v1826_v22 = vld [vmem:[#allocation10 + $0xb38] sm:$0xff] }
 0x1a5   :  { %2083 = vmatpush1.msra.mxu0 %v1849_v50  ;;  %2010 = vmatpush1.msra.mxu1 %v1713_v28  ;;  %v1690_v49 = vld [vmem:[#allocation10 + $0x6f8] sm:$0xff]  ;;  %v1825_v50 = vld [vmem:[#allocation10 + $0xb30] sm:$0xff] }
 0x1a6   :  { %2084 = vmatprep.subr.mxu0 %v1846_v54  ;;  %2495 = vmatprep.mubr.msk.f32.mxu0 %vm1144_vm15, %v3325_v29  ;;  %v1689_v28 = vld [vmem:[#allocation10 + $0x6f0] sm:$0xff]  ;;  %v1822_v54 = vld [vmem:[#allocation10 + $0xb18] sm:$0xff] }
 0x1a7   :  { %1998 = vmatprep.mubr.f32.mxu1 %v3326_v61  ;;  %2011 = vmatprep.subr.mxu1 %v1710_v46  ;;  %v1686_v46 = vld [vmem:[#allocation10 + $0x6d8] sm:$0xff] }
 0x1a8   :  { %2085 = vmatpush1.msra.mxu0 %v1845_v56  ;;  %2498 = vmatmul.mubr.msk.f32.gmra.mxu1 %vm1145_vm0, %v3325_v29  ;;  %v1821_v56 = vld [vmem:[#allocation10 + $0xb10] sm:$0xff] }
 0x1a9   :  { %2496 = vmatmul.mubr.msk.f32.gmra.mxu0 %vm1143_vm1, %v3325_v29  ;;  %2012 = vmatpush1.msra.mxu1 %v1709_v57  ;;  %v1685_v57 = vld [vmem:[#allocation10 + $0x6d0] sm:$0xff] }
 0x1aa   :  { %2086 = vmatprep.subr.mxu0 %v1842_v27  ;;  %2013 = vmatprep.subr.mxu1 %v1706_v60  ;;  %v1818_v27 = vld [vmem:[#allocation10 + $0xaf8] sm:$0xff] }
 0x1ab   :  { %2087 = vmatpush1.msra.mxu0 %v1841_v19  ;;  %2014 = vmatpush1.msra.mxu1 %v1705_v24  ;;  %v1682_v60 = vld [vmem:[#allocation10 + $0x6b8] sm:$0xff]  ;;  %v1817_v19 = vld [vmem:[#allocation10 + $0xaf0] sm:$0xff] }
 0x1ac   :  { %2088 = vmatprep.subr.mxu0 %v1838_v4  ;;  %2015 = vmatprep.subr.mxu1 %v1702_v17  ;;  %v1681_v24 = vld [vmem:[#allocation10 + $0x6b0] sm:$0xff]  ;;  %v1814_v4 = vld [vmem:[#allocation10 + $0xad8] sm:$0xff] }
 0x1ad   :  { %2089 = vmatpush1.msra.mxu0 %v1837_v51  ;;  %2016 = vmatpush1.msra.mxu1 %v1701_v10  ;;  %v1678_v17 = vld [vmem:[#allocation10 + $0x698] sm:$0xff]  ;;  %v1813_v51 = vld [vmem:[#allocation10 + $0xad0] sm:$0xff] }
 0x1ae   :  { %2090 = vmatprep.subr.mxu0 %v1834_v2  ;;  %2017 = vmatprep.subr.mxu1 %v1698_v6  ;;  %v1677_v10 = vld [vmem:[#allocation10 + $0x690] sm:$0xff]  ;;  %v1810_v2 = vld [vmem:[#allocation10 + $0xab8] sm:$0xff] }
 0x1af   :  { %2091 = vmatpush1.msra.mxu0 %v1833_v0  ;;  %2018 = vmatpush1.msra.mxu1 %v1697_v9  ;;  %v1674_v6 = vld [vmem:[#allocation10 + $0x678] sm:$0xff]  ;;  %v1809_v0 = vld [vmem:[#allocation10 + $0xab0] sm:$0xff] }
 0x1b0   :  { %2092 = vmatprep.subr.mxu0 %v1830_v11  ;;  %2019 = vmatprep.subr.mxu1 %v1694_v20  ;;  %v1673_v9 = vld [vmem:[#allocation10 + $0x670] sm:$0xff]  ;;  %v1806_v11 = vld [vmem:[#allocation10 + $0xa98] sm:$0xff] }
 0x1b1   :  { %2093 = vmatpush1.msra.mxu0 %v1829_v21  ;;  %2020 = vmatpush1.msra.mxu1 %v1693_v30  ;;  %v1670_v20 = vld [vmem:[#allocation10 + $0x658] sm:$0xff]  ;;  %v1805_v21 = vld [vmem:[#allocation10 + $0xa90] sm:$0xff] }
 0x1b2   :  { %2094 = vmatprep.subr.mxu0 %v1826_v22  ;;  %2021 = vmatprep.subr.mxu1 %v1690_v49  ;;  %v1669_v30 = vld [vmem:[#allocation10 + $0x650] sm:$0xff]  ;;  %v1802_v22 = vld [vmem:[#allocation10 + $0xa78] sm:$0xff] }
 0x1b3   :  { %2095 = vmatpush1.msra.mxu0 %v1825_v50  ;;  %2022 = vmatpush1.msra.mxu1 %v1689_v28  ;;  %v1666_v49 = vld [vmem:[#allocation10 + $0x638] sm:$0xff]  ;;  %v1801_v50 = vld [vmem:[#allocation10 + $0xa70] sm:$0xff] }
 0x1b4   :  { %2096 = vmatprep.subr.mxu0 %v1822_v54  ;;  %2023 = vmatprep.subr.mxu1 %v1686_v46  ;;  %v1665_v28 = vld [vmem:[#allocation10 + $0x630] sm:$0xff]  ;;  %v1798_v54 = vld [vmem:[#allocation10 + $0xa58] sm:$0xff] }
 0x1b5   :  { %2097 = vmatpush1.msra.mxu0 %v1821_v56  ;;  %2024 = vmatpush1.msra.mxu1 %v1685_v57  ;;  %v1662_v46 = vld [vmem:[#allocation10 + $0x618] sm:$0xff]  ;;  %v1797_v56 = vld [vmem:[#allocation10 + $0xa50] sm:$0xff] }
 0x1b6   :  { %2098 = vmatprep.subr.mxu0 %v1818_v27  ;;  %2025 = vmatprep.subr.mxu1 %v1682_v60  ;;  %v1661_v57 = vld [vmem:[#allocation10 + $0x610] sm:$0xff]  ;;  %v1794_v27 = vld [vmem:[#allocation10 + $0xa38] sm:$0xff] }
 0x1b7   :  { %2099 = vmatpush1.msra.mxu0 %v1817_v19  ;;  %2026 = vmatpush1.msra.mxu1 %v1681_v24  ;;  %v1786_v60 = vld [vmem:[#allocation10 + $0x9f8] sm:$0xff]  ;;  %v1793_v19 = vld [vmem:[#allocation10 + $0xa30] sm:$0xff] }
 0x1b8   :  { %2100 = vmatprep.subr.mxu0 %v1814_v4  ;;  %2027 = vmatprep.subr.mxu1 %v1678_v17  ;;  %v1785_v24 = vld [vmem:[#allocation10 + $0x9f0] sm:$0xff]  ;;  %v1790_v4 = vld [vmem:[#allocation10 + $0xa18] sm:$0xff] }
 0x1b9   :  { %2101 = vmatpush1.msra.mxu0 %v1813_v51  ;;  %2028 = vmatpush1.msra.mxu1 %v1677_v10  ;;  %v1782_v17 = vld [vmem:[#allocation10 + $0x9d8] sm:$0xff]  ;;  %v1789_v51 = vld [vmem:[#allocation10 + $0xa10] sm:$0xff] }
 0x1ba   :  { %2102 = vmatprep.subr.mxu0 %v1810_v2  ;;  %2029 = vmatprep.subr.mxu1 %v1674_v6  ;;  %v1781_v10 = vld [vmem:[#allocation10 + $0x9d0] sm:$0xff]  ;;  %v1778_v2 = vld [vmem:[#allocation10 + $0x9b8] sm:$0xff] }
 0x1bb   :  { %2103 = vmatpush1.msra.mxu0 %v1809_v0  ;;  %2030 = vmatpush1.msra.mxu1 %v1673_v9  ;;  %v1777_v6 = vld [vmem:[#allocation10 + $0x9b0] sm:$0xff]  ;;  %v1774_v0 = vld [vmem:[#allocation10 + $0x998] sm:$0xff] }
 0x1bc   :  { %2104 = vmatprep.subr.mxu0 %v1806_v11  ;;  %2031 = vmatprep.subr.mxu1 %v1670_v20  ;;  %v1770_v9 = vld [vmem:[#allocation10 + $0x978] sm:$0xff]  ;;  %v1769_v11 = vld [vmem:[#allocation10 + $0x970] sm:$0xff] }
 0x1bd   :  { %2105 = vmatpush1.msra.mxu0 %v1805_v21  ;;  %2032 = vmatpush1.msra.mxu1 %v1669_v30  ;;  %v1766_v20 = vld [vmem:[#allocation10 + $0x958] sm:$0xff]  ;;  %v1765_v21 = vld [vmem:[#allocation10 + $0x950] sm:$0xff] }
 0x1be   :  { %2106 = vmatprep.subr.mxu0 %v1802_v22  ;;  %2033 = vmatprep.subr.mxu1 %v1666_v49  ;;  %v1761_v30 = vld [vmem:[#allocation10 + $0x930] sm:$0xff]  ;;  %v1758_v22 = vld [vmem:[#allocation10 + $0x918] sm:$0xff] }
 0x1bf   :  { %2107 = vmatpush1.msra.mxu0 %v1801_v50  ;;  %2034 = vmatpush1.msra.mxu1 %v1665_v28  ;;  %v1757_v49 = vld [vmem:[#allocation10 + $0x910] sm:$0xff]  ;;  %v1754_v50 = vld [vmem:[#allocation10 + $0x8f8] sm:$0xff] }
 0x1c0   :  { %2108 = vmatprep.subr.mxu0 %v1798_v54  ;;  %2035 = vmatprep.subr.mxu1 %v1662_v46  ;;  %v1753_v28 = vld [vmem:[#allocation10 + $0x8f0] sm:$0xff]  ;;  %v1750_v54 = vld [vmem:[#allocation10 + $0x8d8] sm:$0xff] }
 0x1c1   :  { %2109 = vmatpush1.msra.mxu0 %v1797_v56  ;;  %2036 = vmatpush1.msra.mxu1 %v1661_v57  ;;  %v1749_v46 = vld [vmem:[#allocation10 + $0x8d0] sm:$0xff]  ;;  %v1746_v56 = vld [vmem:[#allocation10 + $0x8b8] sm:$0xff] }
 0x1c2   :  { %2499 = vmatprep.mubr.msk.f32.mxu1 %vm1141_vm13, %v3325_v29  ;;  %2110 = vmatprep.subr.mxu0 %v1794_v27  ;;  %v1741_v57 = vld [vmem:[#allocation10 + $0x890] sm:$0xff]  ;;  %v1738_v27 = vld [vmem:[#allocation10 + $0x878] sm:$0xff]  ;;  %vm2180_vm13 = vcmp.ge.f32.partialorder %v3038_v12, 2.0 }
 0x1c3   :  { %2037 = vmatprep.subr.mxu1 %v1786_v60  ;;  %2111 = vmatpush1.msra.mxu0 %v1793_v19  ;;  %v1737_v60 = vld [vmem:[#allocation10 + $0x870] sm:$0xff]  ;;  %v1734_v19 = vld [vmem:[#allocation10 + $0x858] sm:$0xff] }
 0x1c4   :  { %2038 = vmatpush2.msra.mxu1 %v1785_v24  ;;  %2112 = vmatprep.subr.mxu0 %v1790_v4  ;;  %v1733_v24 = vld [vmem:[#allocation10 + $0x850] sm:$0xff]  ;;  %v1730_v4 = vld [vmem:[#allocation10 + $0x838] sm:$0xff] }
 0x1c5   :  { %2039 = vmatprep.subr.mxu1 %v1782_v17  ;;  %2113 = vmatpush1.msra.mxu0 %v1789_v51  ;;  %v1729_v17 = vld [vmem:[#allocation10 + $0x830] sm:$0xff]  ;;  %v1726_v51 = vld [vmem:[#allocation10 + $0x818] sm:$0xff] }
 0x1c6   :  { %2146 = vmatprep.mubr.f32.mxu0 %v3326_v61  ;;  %2040 = vmatpush2.msra.mxu1 %v1781_v10  ;;  %v1725_v10 = vld [vmem:[#allocation10 + $0x810] sm:$0xff] }
 0x1c7   :  { %2503 = vmatmul.mubr.msk.f32.vlgmr.msra.gmra.mxu0 %vm1142_vm12, %v3325_v29  ;;  %2041 = vmatprep.subr.mxu1 %v1778_v2  ;;  %vm2162_vm12 = vcmp.ge.f32.partialorder %v3005_v59, 2.0 }
 0x1c8   :  { %2042 = vmatpush2.msra.mxu1 %v1777_v6  ;;  %2152 = vmatprep.mubr.f32.mxu0 %v3326_v61 }
 0x1c9   :  { %2043 = vmatprep.subr.mxu1 %v1774_v0 }
 0x1ca   :  { %2044 = vmatpush2.msra.mxu1 %v1773_v3 }
 0x1cb   :  { %2045 = vmatprep.subr.mxu1 %v1770_v9  ;;  %2504 = vmatmul.mubr.msk.f32.gmra.mxu0 %vm1145_vm0, %v3325_v29  ;;  %vm3226_vm0 = vmand %vm2179_vm6, %vm2183_vm7  ;;  %vm2182_vm6 = vcmp.ge.f32.partialorder %v3031_v62, 2.0  ;;  %vm2186_vm7 = vcmp.le.f32.partialorder %v3031_v62, 40.0 }
 0x1cc   :  { %2046 = vmatpush2.msra.mxu1 %v1769_v11 }
 0x1cd   :  { %2047 = vmatprep.subr.mxu1 %v1766_v20 }
 0x1ce   :  { %2048 = vmatpush2.msra.mxu1 %v1765_v21 }
 0x1cf   :  { %2049 = vmatprep.subr.mxu1 %v1762_v18 }
 0x1d0   :  { %2050 = vmatpush2.msra.mxu1 %v1761_v30 }
 0x1d1   :  { %2051 = vmatprep.subr.mxu1 %v1758_v22 }
 0x1d2   :  { %2052 = vmatpush2.msra.mxu1 %v1757_v49 }
 0x1d3   :  { %2053 = vmatprep.subr.mxu1 %v1754_v50 }
 0x1d4   :  { %2054 = vmatpush2.msra.mxu1 %v1753_v28 }
 0x1d5   :  { %2055 = vmatprep.subr.mxu1 %v1750_v54 }
 0x1d6   :  { %2056 = vmatpush2.msra.mxu1 %v1749_v46 }
 0x1d7   :  { %2057 = vmatprep.subr.mxu1 %v1746_v56 }
 0x1d8   :  { %2058 = vmatpush2.msra.mxu1 %v1745_v8 }
 0x1d9   :  { %2059 = vmatprep.subr.mxu1 %v1742_v63 }
 0x1da   :  { %2060 = vmatpush2.msra.mxu1 %v1741_v57 }
 0x1db   :  { %2061 = vmatprep.subr.mxu1 %v1738_v27 }
 0x1dc   :  { %2062 = vmatpush2.msra.mxu1 %v1737_v60 }
 0x1dd   :  { %2063 = vmatprep.subr.mxu1 %v1734_v19 }
 0x1de   :  { %2064 = vmatpush2.msra.mxu1 %v1733_v24 }
 0x1df   :  { %2065 = vmatprep.subr.mxu1 %v1730_v4 }
 0x1e0   :  { %2066 = vmatpush2.msra.mxu1 %v1729_v17 }
 0x1e1   :  { %2067 = vmatprep.subr.mxu1 %v1726_v51 }
 0x1e2   :  { %2068 = vmatpush2.msra.mxu1 %v1725_v10 }
 0x1e3   :  { %2500 = vmatmul.mubr.msk.f32.vlgmr.msra.gmra.mxu1 %vm1140_vm14, %v3325_v29  ;;  %vm2184_vm14 = vcmp.le.f32.partialorder %v3038_v12, 40.0 }
 0x1e4   :  { %2501 = vmatprep.mubr.msk.f32.mxu1 %vm1144_vm15, %v3325_v29  ;;  %vm2166_vm15 = vcmp.le.f32.partialorder %v3005_v59, 40.0  ;;  %vm3246_vm4 = vmand %vm2180_vm13, %vm2184_vm14  ;;  %vm2423_vm13 = vcmask 1047559  }
 0x1e5   :  { %vm3257_vm5 = vmand %vm2162_vm12, %vm2166_vm15  ;;  %v2510_v13 = vsel %vm3246_vm4, 1.0, %v3326_v61  ;;  %vm2421_vm12 = vcmask 1045509  }
 0x1e7   :  { %2502 = vmatmul.mubr.msk.f32.gmra.mxu1 %vm1143_vm1, %v3325_v29  ;;  %vm3234_vm1 = vmand %vm2160_vm9, %vm2164_vm10  ;;  %vm2417_vm10 = vcmask 1041409  }
 0x1e8   :  { %vm3290_vm9 = vmand %vm2182_vm6, %vm2186_vm7 }
 0x1f9   :  { %v3156_v0 = vpop.f32.mrf.mxu1 }
 0x1fb   :  { %v3160_v58 = vpop.f32.mrf.mxu1 }
 0x1fc   :  { %v3152_v2 = vpop.f32.mrf.mxu0 }
 0x1fe   :  { %v3154_v6 = vpop.f32.mrf.mxu0 }
 0x201   :  { %v3158_v3 = vpop.f32.mrf.mxu0 }
 0x202   :  { %v3162_v9 = vpop.f32.mrf.mxu1 }
 0x203   :  { %v3164_v11 = vpop.f32.mrf.mxu0  ;;  %v1500_v25 = vadd.f32 %v3162_v9, %v3158_v3 }
 0x204   :  { %v3166_v31 = vpop.f32.mrf.mxu1 }
 0x205   :  { %v1502_v3 = vadd.f32 %v3166_v31, %v3164_v11  ;;  %v2216_v11 = vadd.f32 %v1500_v25, %v2919_v36 }
 0x21f   :  { %v1647_v15 = vpop.f32.mrf.mxu0 }
 0x221   :  { %v1649_v20 = vpop.f32.mrf.mxu0 }
 0x239   :  { %v1653_v16 = vpop.f32.mrf.mxu0 }
 0x23b   :  { %v1655_v21 = vpop.f32.mrf.mxu0 }
 0x23c   :  { %v1570_v14 = vpop.f32.mrf.mxu1 }
 0x23d   :  { %v1648_v28 = vadd.f32 %v1647_v15, %v1570_v14 }
 0x23e   :  { %v1572_v29 = vpop.f32.mrf.mxu1 }
 0x23f   :  { %v1650_v54 = vadd.f32 %v1649_v20, %v1572_v29  ;;  %v2222_v63 = vadd.f32 %v1648_v28, %v2913_v33 }
 0x241   :  { %v2223_v57 = vadd.f32 %v1650_v54, %v2917_v35  ;;  %v2517_v17 = vmul.f32 -1.442695, %v2222_v63 }
 0x242   :  { %v1576_v18 = vpop.f32.mrf.mxu1 }
 0x243   :  { %v1654_v56 = vadd.f32 %v1653_v16, %v1576_v18  ;;  %v2518_v51 = vmul.f32 -1.442695, %v2223_v57  ;;  %2577 = vpow2.f32 %v2517_v17 }
 0x244   :  { %v1578_v22 = vpop.f32.mrf.mxu1 }
 0x245   :  { %v1656_v27 = vadd.f32 %v1655_v21, %v1578_v22  ;;  %v2224_v24 = vadd.f32 %v1654_v56, %v2921_v37  ;;  %2579 = vpow2.f32 %v2518_v51 }
 0x247   :  { %v2225_v10 = vadd.f32 %v1656_v27, %v2925_v39  ;;  %v2519_v20 = vmul.f32 -1.442695, %v2224_v24 }
 0x249   :  { %v2520_v35 = vmul.f32 -1.442695, %v2225_v10  ;;  %2581 = vpow2.f32 %v2519_v20 }
 0x24b   :  { %2583 = vpow2.f32 %v2520_v35 }
 0x250   :  { %v2578_v51 = vpop.eup %2577 }
 0x252   :  { %v2580_v10 = vpop.eup %2579 }
 0x256   :  { %v2582_v20 = vpop.eup %2581 }
 0x257   :  { %v2240_v35 = vadd.f32 1.0, %v2582_v20 }
 0x25f   :  { %v3172_v50 = vpop.f32.mrf.mxu1 }
 0x261   :  { %v3176_v8 = vpop.f32.mrf.mxu1 }
 0x263   :  { %v3168_v30 = vpop.f32.mrf.mxu0 }
 0x265   :  { %v3170_v49 = vpop.f32.mrf.mxu0 }
 0x268   :  { %v3180_v60 = vpop.f32.mrf.mxu1 }
 0x269   :  { %v3174_v46 = vpop.f32.mrf.mxu0 }
 0x26a   :  { %v3186_v15 = vpop.f32.mrf.mxu1 }
 0x26b   :  { %v3182_v19 = vpop.f32.mrf.mxu0 }
 0x287   :  { %v2148_v4 = vpop.f32.mrf.mxu0 }
 0x289   :  { %v2150_v14 = vpop.f32.mrf.mxu0 }
 0x28b   :  { %v2154_v29 = vpop.f32.mrf.mxu0 }
 0x28d   :  { %v2156_v56 = vpop.f32.mrf.mxu0 }
 0x2a3   :  { %v2071_v16 = vpop.f32.mrf.mxu1 }
 0x2a4   :  { %v2149_v33 = vadd.f32 %v2148_v4, %v2071_v16  ;;  %v2584_v16 = vpop.eup %2583 }
 0x2a5   :  { %v2073_v21 = vpop.f32.mrf.mxu1 }
 0x2a6   :  { %v2262_v18 = vadd.f32 %v2149_v33, %v2929_v42  ;;  %v2151_v22 = vadd.f32 %v2150_v14, %v2073_v21  ;;  %v2239_v14 = vadd.f32 1.0, %v2580_v10 }
 0x2a7   :  { %v2077_v37 = vpop.f32.mrf.mxu1 }
 0x2a8   :  { %v2521_v28 = vmul.f32 -1.442695, %v2262_v18  ;;  %v2263_v54 = vadd.f32 %v2151_v22, %v2935_v45  ;;  %v2155_v39 = vadd.f32 %v2154_v29, %v2077_v37  ;;  %v2238_v45 = vadd.f32 1.0, %v2578_v51 }
 0x2a9   :  { %v2079_v63 = vpop.f32.mrf.mxu1 }
 0x2aa   :  { %2585 = vpow2.f32 %v2521_v28  ;;  %v2522_v57 = vmul.f32 -1.442695, %v2263_v54  ;;  %v2264_v27 = vadd.f32 %v2155_v39, %v2940_v48  ;;  %v2157_v24 = vadd.f32 %v2156_v56, %v2079_v63 }
 0x2ab   :  { %v2241_v48 = vadd.f32 1.0, %v2584_v16  ;;  %v1494_v28 = vadd.f32 %v3156_v0, %v3152_v2  ;;  %v1995_v54 = vadd.f32 %v3172_v50, %v3168_v30  ;;  %v1496_v56 = vadd.f32 %v3160_v58, %v3154_v6 }
 0x2ac   :  { %2587 = vpow2.f32 %v2522_v57  ;;  %v2523_v4 = vmul.f32 -1.442695, %v2264_v27  ;;  %v2265_v17 = vadd.f32 %v2157_v24, %v2945_v53  ;;  %v1997_v2 = vadd.f32 %v3176_v8, %v3170_v49 }
 0x2ad   :  { %v2214_v55 = vadd.f32 %v1494_v28, %v2911_v32  ;;  %v2254_v6 = vadd.f32 %v1995_v54, %v2927_v41  ;;  %v2001_v0 = vadd.f32 %v3180_v60, %v3174_v46  ;;  %v2215_v12 = vadd.f32 %v1496_v56, %v2915_v34 }
 0x2ae   :  { %2589 = vpow2.f32 %v2523_v4  ;;  %v2524_v42 = vmul.f32 -1.442695, %v2265_v17  ;;  %v2505_v32 = vsel %vm3206_vm8, 1.0, %v3326_v61  ;;  %v2255_v9 = vadd.f32 %v1997_v2, %v2933_v44  ;;  %vm3274_vm8 = vmand %vm2181_vm2, %vm2185_vm3 }
 0x2af   :  { %v2003_v30 = vadd.f32 %v3186_v15, %v3182_v19  ;;  %v2509_v44 = vsel %vm3226_vm0, 1.0, %v3326_v61  ;;  %v2506_v50 = vsel %vm3234_vm1, 1.0, %v3326_v61  ;;  %v2218_v46 = vmul.f32 %v2505_v32, %v2214_v55 }
 0x2b0   :  { %2591 = vpow2.f32 %v2524_v42  ;;  %v2258_v8 = vmul.f32 %v2509_v44, %v2254_v6  ;;  %v2256_v36 = vadd.f32 %v2001_v0, %v2938_v47  ;;  %v2507_v19 = vsel %vm3216_vm11, 1.0, %v3326_v61 }
 0x2b1   :  { %2593 = vrcp.f32 %v2238_v45  ;;  %v2219_v15 = vmul.f32 %v2506_v50, %v2215_v12  ;;  %v2217_v57 = vadd.f32 %v1502_v3, %v2923_v38  ;;  %v2259_v4 = vmul.f32 %v2510_v13, %v2255_v9 }
 0x2b2   :  { %2595 = vrcp.f32 %v2239_v14  ;;  %v2257_v17 = vadd.f32 %v2003_v30, %v2943_v52  ;;  %v2508_v38 = vsel %vm3257_vm5, 1.0, %v3326_v61  ;;  %v2220_v10 = vmul.f32 %v2507_v19, %v2216_v11 }
 0x2b3   :  { %v2511_v20 = vsel %vm3274_vm8, 1.0, %v3326_v61  ;;  %v2512_v52 = vsel %vm3290_vm9, 1.0, %v3326_v61  ;;  %v2773_v50 = vmov 1983009808   ;;  %vm2419_vm11 = vcmask 1043459  }
 0x2b4   :  { %v2260_v14 = vmul.f32 %v2511_v20, %v2256_v36 }
 0x2b7   :  { %v2586_v33 = vpop.eup %2585 }
 0x2b8   :  { %v2278_v29 = vadd.f32 1.0, %v2586_v33 }
 0x2b9   :  { %v2588_v21 = vpop.eup %2587 }
 0x2ba   :  { %2597 = vrcp.f32 %v2278_v29  ;;  %v2279_v18 = vadd.f32 1.0, %v2588_v21  ;;  %v2221_v29 = vmul.f32 %v2508_v38, %v2217_v57 }
 0x2bb   :  { %v2590_v22 = vpop.eup %2589  ;;  %2599 = vrcp.f32 %v2240_v35 }
 0x2bc   :  { %2601 = vrcp.f32 %v2279_v18  ;;  %v2280_v53 = vadd.f32 1.0, %v2590_v22 }
 0x2bd   :  { %v2592_v37 = vpop.eup %2591  ;;  %2603 = vrcp.f32 %v2241_v48  ;;  %v2261_v48 = vmul.f32 %v2512_v52, %v2257_v17 }
 0x2be   :  { %2605 = vrcp.f32 %v2280_v53  ;;  %v2281_v39 = vadd.f32 1.0, %v2592_v37  ;;  %v2594_v49 = vpop.eup %2593 }
 0x2bf   :  { %v2596_v31 = vpop.eup %2595  ;;  %v2250_v47 = vmul.f32 %v2594_v49, %v2218_v46 }
 0x2c0   :  { %2607 = vrcp.f32 %v2281_v39  ;;  %v2251_v45 = vmul.f32 %v2596_v31, %v2219_v15 }
 0x2c7   :  { %v2598_v60 = vpop.eup %2597 }
 0x2c8   :  { %v2600_v27 = vpop.eup %2599  ;;  %v2290_v42 = vmul.f32 %v2598_v60, %v2258_v8 }
 0x2c9   :  { %v2602_v51 = vpop.eup %2601  ;;  %v2252_v21 = vmul.f32 %v2600_v27, %v2220_v10 }
 0x2ca   :  { %v2604_v62 = vpop.eup %2603  ;;  %v2294_v16 = vadd.f32 %v2290_v42, %v2250_v47  ;;  %v2291_v33 = vmul.f32 %v2602_v51, %v2259_v4 }
 0x2cb   :  { %v2606_v35 = vpop.eup %2605  ;;  %v2253_v28 = vmul.f32 %v2604_v62, %v2221_v29 }
 0x2cc   :  { %v2295_v18 = vadd.f32 %v2291_v33, %v2251_v45  ;;  %v2292_v22 = vmul.f32 %v2606_v35, %v2260_v14  ;;  %v2360_v53 = vadd.f32 %v3051_v23, %v2294_v16 }
 0x2cd   :  { %v2608_v37 = vpop.eup %2607 }
 0x2ce   :  { %v2296_v54 = vadd.f32 %v2292_v22, %v2252_v21  ;;  %v2293_v39 = vmul.f32 %v2608_v37, %v2261_v48  ;;  %v2361_v56 = vadd.f32 %v3055_v26, %v2295_v18  ;;  %v2364_v63 = vrot.slane %v2360_v53, 4 }
 0x2d0   :  { %v2297_v2 = vadd.f32 %v2293_v39, %v2253_v28  ;;  %v2362_v40 = vadd.f32 %v3057_v1, %v2296_v54  ;;  %v2365_v25 = vadd.f32 %v2364_v63, %v2360_v53  ;;  %v2370_v5 = vrot.slane %v2361_v56, 4 }
 0x2d2   :  { %v2363_v55 = vadd.f32 %v3060_v7, %v2297_v2  ;;  %v2366_v61 = vrot.slane %v2365_v25, 2  ;;  %v2371_v6 = vadd.f32 %v2370_v5, %v2361_v56  ;;  %v2376_v0 = vrot.slane %v2362_v40, 4 }
 0x2d3   :  { %v2398_v7 = vunpack.c.l.s4 %v2773_v50 }
 0x2d4   :  { %v2367_v58 = vadd.f32 %v2366_v61, %v2365_v25  ;;  %v2372_v12 = vrot.slane %v2371_v6, 2  ;;  %v2377_v23 = vadd.f32 %v2376_v0, %v2362_v40  ;;  %v2382_v3 = vrot.slane %v2363_v55, 4 }
 0x2d5   :  { %v2399_v15 = vunpack.c.0.s8 %v2398_v7 }
 0x2d6   :  { %v2368_v32 = vrot.slane %v2367_v58, 1  ;;  %v2373_v41 = vadd.f32 %v2372_v12, %v2371_v6  ;;  %v2378_v9 = vrot.slane %v2377_v23, 2  ;;  %v2383_v30 = vadd.f32 %v2382_v3, %v2363_v55 }
 0x2d7   :  { %v2402_v27 = vsub.s32 %v2399_v15, %v2931_v43 }
 0x2d8   :  { %v2369_v26 = vadd.f32 %v2368_v32, %v2367_v58  ;;  %v2374_v49 = vrot.slane %v2373_v41, 1  ;;  %v2379_v34 = vadd.f32 %v2378_v9, %v2377_v23  ;;  %v2384_v11 = vrot.slane %v2383_v30, 2 }
 0x2da   :  { %v2375_v1 = vadd.f32 %v2374_v49, %v2373_v41  ;;  %v2380_v44 = vrot.slane %v2379_v34, 1  ;;  %v2385_v31 = vadd.f32 %v2384_v11, %v2383_v30  ;;  %v2388_v8 = vmax.f32 %v2369_v26, 0.0 }
 0x2dc   :  { %v2381_v59 = vadd.f32 %v2380_v44, %v2379_v34  ;;  %v2386_v46 = vrot.slane %v2385_v31, 1  ;;  %v2389_v36 = vmax.f32 %v2375_v1, 0.0 }
 0x2de   :  { %v2387_v60 = vadd.f32 %v2386_v46, %v2385_v31  ;;  %v2396_v19 = vcombine.low %v2388_v8, %v2389_v36  ;;  %v2390_v57 = vmax.f32 %v2381_v59, 0.0 }
 0x2e0   :  { %v2391_v13 = vmax.f32 %v2387_v60, 0.0  ;;  %v2403_v4 = vrot.slane %v2396_v19, %v2402_v27 }
 0x2e2   :  { %v2404_v24 = vcombine.low %v2390_v57, %v2391_v13 }
 0x2e4   :  { %v2411_v47 = vrot.slane %v2404_v24, %v2402_v27 }
 0x2e6   :  { %v2416_v17 = vrot.slane %v2411_v47, 7 }
 0x2e8   :  { %v2418_v42 = vsel %vm2417_vm10, %v2416_v17, %v2403_v4 }
 0x2e9   :  { %v2420_v51 = vsel %vm2419_vm11, %v2416_v17, %v2418_v42 }
 0x2ea   :  { %v2422_v38 = vsel %vm2421_vm12, %v2416_v17, %v2420_v51 }
 0x2eb   :  { %v2424_v10 = vsel %vm2423_vm13, %v2416_v17, %v2422_v38 }
 0x2ec   :  { %2426 = vst [vmem:[#allocation13] sm:$0xf] %v2424_v10 }
 0x2ed   :  { %2740 = shalt.err (!%p2737_p6)
}
 0x2ee   :  { %2436 = dma.vmem_to_hbm [thread:$0]  %s2434_s3, 64, %s3320_s8, [#allocation4]  }
 0x2ef   :  { %2757 = dma.done.wait [#allocation4], 64  }
 0x2f0   :  { %2758 = vsyncadd [#allocation4], 4294967232 }
 0x2f1   :  { %2440 = vsyncpa [#allocation3], 1 }
 0x2f2   :  { %2441 = vsyncpa [#allocation6], 1 }
 0x2f3   :  { %2442 = vsyncpa [#allocation9], 1 }
 0x2f4   :  { %2443 = vsyncpa [#allocation12], 1 }
 0x2f5   :  { %2444 = vsyncpa [#allocation4], 1 }

</bundles_post_ra>
